<compile_context>
chip_gen: v5e
topology: v5e:2x2
jax: 0.10.0
libtpu: 0.0.40
codegen_flags: <defaults>
</compile_context>

<pallas_src>
import functools

import jax
import jax.numpy as jnp
from jax.experimental import pallas as pl
from jax.experimental.pallas import tpu as pltpu


# ----------------------------- in-kernel helpers ---------------------------

def _gelu(x):
    # tanh-approximate GELU (VPU + EUP).
    # TODO(synk): HF BertIntermediate defaults to exact erf GELU; diff ~1e-3.
    c = jnp.float32(0.7978845608028654)  # sqrt(2/pi)
    return 0.5 * x * (1.0 + jnp.tanh(c * (x + 0.044715 * x * x * x)))


def _layernorm(x, g, b, eps):
    mu = jnp.mean(x, axis=-1, keepdims=True)
    var = jnp.mean((x - mu) * (x - mu), axis=-1, keepdims=True)
    return (x - mu) * jax.lax.rsqrt(var + eps) * g + b


# --------------- fused BERT encoder layer (one kernel / layer) -------------
#
# Grid = (B,): each grid step handles one batch element's (S, H) activations.
# Optionally also applies the embedding LayerNorm (layer 0) and the
# pooler + classifier + softmax head (last layer).

def _encoder_layer_kernel(*refs, n_heads, eps, input_ln, with_head):
    refs = list(refs)
    o_ref = refs.pop()                       # single output ref (last)
    it = iter(refs)
    x_ref, mask_ref = next(it), next(it)
    if input_ln:
        ing_ref, inb_ref = next(it), next(it)
    (wqkv_ref, bqkv_ref, wo_ref, bo_ref,
     ln1g_ref, ln1b_ref,
     wi_ref, bi_ref, wo2_ref, bo2_ref,
     ln2g_ref, ln2b_ref) = (next(it) for _ in range(12))
    if with_head:
        pw_ref, pb_ref, ow_ref, ob_ref = next(it), next(it), next(it), next(it)

    x = x_ref[0].astype(jnp.float32)         # (S, H) — one batch element
    if input_ln:                             # fused embedding LayerNorm (layer 0)
        x = _layernorm(x, ing_ref[...], inb_ref[...], eps)

    h = x.shape[-1]
    dh = h // n_heads
    scale = jnp.float32(1.0 / float(dh) ** 0.5)

    # Fused QKV projection: one MXU pass (bf16 operands, f32 accumulation).
    qkv = (jnp.dot(x.astype(jnp.bfloat16), wqkv_ref[...],
                   preferred_element_type=jnp.float32) + bqkv_ref[...])  # (S, 3H)

    # Additive attention mask built & broadcast in-kernel: (1, S).
    addm = (1.0 - mask_ref[0].astype(jnp.float32)) * jnp.float32(-10000.0)

    # Per-head attention as plain 2-D matmuls (grid already carries the batch
    # dim); per-head contexts are merged along lanes, then ONE full-K output
    # projection is issued (no serial full-width accumulation).
    ctx_heads = []
    for hd in range(n_heads):
        qh = qkv[:, hd * dh:(hd + 1) * dh].astype(jnp.bfloat16)
        kh = qkv[:, h + hd * dh: h + (hd + 1) * dh].astype(jnp.bfloat16)
        vh = qkv[:, 2 * h + hd * dh: 2 * h + (hd + 1) * dh].astype(jnp.bfloat16)

        sc = jnp.einsum("qd,kd->qk", qh, kh,
                        preferred_element_type=jnp.float32)      # (S, S)
        sc = sc * scale + addm
        sc = sc - jnp.max(sc, axis=-1, keepdims=True)
        p = jnp.exp(sc)
        p = p * pl.reciprocal(jnp.sum(p, axis=-1, keepdims=True), approx=True)
        ctx_heads.append(jnp.dot(p.astype(jnp.bfloat16), vh,
                                 preferred_element_type=jnp.float32))  # (S, dh)

    ctx = jnp.concatenate(ctx_heads, axis=-1)                    # (S, H) merged heads
    attn = (jnp.dot(ctx.astype(jnp.bfloat16), wo_ref[...],
                    preferred_element_type=jnp.float32) + bo_ref[...])

    # Residual + LayerNorm 1 (f32, stays in VMEM).
    x1 = _layernorm(attn + x, ln1g_ref[...], ln1b_ref[...], eps)

    # FFN (GELU) -> projection -> residual + LayerNorm 2.
    f = (jnp.dot(x1.astype(jnp.bfloat16), wi_ref[...],
                 preferred_element_type=jnp.float32) + bi_ref[...])
    f = _gelu(f)
    f = (jnp.dot(f.astype(jnp.bfloat16), wo2_ref[...],
                 preferred_element_type=jnp.float32) + bo2_ref[...])
    x2 = _layernorm(f + x1, ln2g_ref[...], ln2b_ref[...], eps)

    if with_head:
        # CLS row -> BERT pooler tanh(Linear) -> Dropout(p=0.4, identity in eval)
        # -> classifier Linear -> softmax(dim=1).  Only probs are written to HBM.
        cls = x2[0:1, :]                                          # (1, H)
        pooled = jnp.tanh(jnp.dot(cls.astype(jnp.bfloat16), pw_ref[...],
                                  preferred_element_type=jnp.float32) + pb_ref[...])
        logits = (jnp.dot(pooled.astype(jnp.bfloat16), ow_ref[...],
                          preferred_element_type=jnp.float32) + ob_ref[...])
        logits = logits - jnp.max(logits, axis=-1, keepdims=True)
        e = jnp.exp(logits)
        probs = e / jnp.sum(e, axis=-1, keepdims=True)            # exact division
        o_ref[...] = probs.reshape(o_ref.shape).astype(o_ref.dtype)
    else:
        o_ref[...] = x2.reshape(o_ref.shape).astype(o_ref.dtype)


def encoder_layer(x, mask3, lp, cfg, emb_ln=None, head=None, *, eps=1e-12):
    B, S, H = x.shape
    nH = cfg["n_heads"]

    def _resident(a):
        # Weight stays VMEM-resident: same block index for every grid step.
        idx = (0,) * a.ndim
        return pl.BlockSpec(a.shape, lambda b: idx)

    inputs = [x, mask3]
    in_specs = [pl.BlockSpec((1, S, H), lambda b: (b, 0, 0)),
                pl.BlockSpec((1, 1, S), lambda b: (b, 0, 0))]

    if emb_ln is not None:
        inputs += list(emb_ln)
        in_specs += [_resident(a) for a in emb_ln]

    layer_ws = [lp["wqkv"], lp["bqkv"], lp["wo"], lp["bo"],
                lp["ln1_g"], lp["ln1_b"],
                lp["wi"], lp["bi"], lp["wo2"], lp["bo2"],
                lp["ln2_g"], lp["ln2_b"]]
    inputs += layer_ws
    in_specs += [_resident(a) for a in layer_ws]

    if head is not None:
        inputs += list(head)
        in_specs += [_resident(a) for a in head]
        n_classes = head[2].shape[1]
        out_shape = jax.ShapeDtypeStruct((B, 1, n_classes), jnp.float32)
        out_specs = pl.BlockSpec((1, 1, n_classes), lambda b: (b, 0, 0))
    else:
        # bf16 inter-layer activations halve the HBM round trip.
        out_shape = jax.ShapeDtypeStruct((B, S, H), jnp.bfloat16)
        out_specs = pl.BlockSpec((1, S, H), lambda b: (b, 0, 0))

    kernel = functools.partial(
        _encoder_layer_kernel, n_heads=nH, eps=eps,
        input_ln=emb_ln is not None, with_head=head is not None)

    return pl.pallas_call(
        kernel,
        grid=(B,),
        in_specs=in_specs,
        out_specs=out_specs,
        out_shape=out_shape,
        compiler_params=pltpu.CompilerParams(
            # Batch axis is fully independent -> shard across v7x's 2 TCs.
            dimension_semantics=("parallel",),
            # Explicit scoped-VMEM budget (safe on v5e/v6e/v7x at these tiles);
            # re-derive per generation when tiling BERT-base shapes.
            vmem_limit_bytes=32 * 1024 * 1024),
    )(*inputs)


# --------------------------- model (glue in JAX) ---------------------------

CFG = dict(
    vocab_size=100,
    hidden=32,
    n_layers=2,
    n_heads=4,
    intermediate=64,
    max_pos=16,
    type_vocab=2,
    n_classes=4,
)


def init_params(key, cfg):
    std = 0.02
    h, i, c = cfg["hidden"], cfg["intermediate"], cfg["n_classes"]
    bf = jnp.bfloat16

    def norm(k, shape, dtype=jnp.float32):
        return (std * jax.random.normal(k, shape, dtype=jnp.float32)).astype(dtype)

    keys = iter(jax.random.split(key, 8 + 8 * cfg["n_layers"]))
    p = {
        "word_emb": norm(next(keys), (cfg["vocab_size"], h)),
        "pos_emb": norm(next(keys), (cfg["max_pos"], h)),
        "type_emb": norm(next(keys), (cfg["type_vocab"], h)),
        "emb_ln_g": jnp.ones((1, h), jnp.float32),
        "emb_ln_b": jnp.zeros((1, h), jnp.float32),
        "pool_w": norm(next(keys), (h, h), bf),
        "pool_b": jnp.zeros((1, h), jnp.float32),
        "out_w": norm(next(keys), (h, c), bf),
        "out_b": jnp.zeros((1, c), jnp.float32),
        "layers": [],
    }
    for _ in range(cfg["n_layers"]):
        wq = norm(next(keys), (h, h))
        wk = norm(next(keys), (h, h))
        wv = norm(next(keys), (h, h))
        p["layers"].append({
            # Q|K|V weights concatenated -> single [H, 3H] matmul in-kernel.
            "wqkv": jnp.concatenate([wq, wk, wv], axis=1).astype(bf),
            "bqkv": jnp.zeros((1, 3 * h), jnp.float32),
            "wo": norm(next(keys), (h, h), bf), "bo": jnp.zeros((1, h), jnp.float32),
            "ln1_g": jnp.ones((1, h), jnp.float32), "ln1_b": jnp.zeros((1, h), jnp.float32),
            "wi": norm(next(keys), (h, i), bf), "bi": jnp.zeros((1, i), jnp.float32),
            "wo2": norm(next(keys), (i, h), bf), "bo2": jnp.zeros((1, h), jnp.float32),
            "ln2_g": jnp.ones((1, h), jnp.float32), "ln2_b": jnp.zeros((1, h), jnp.float32),
        })
    return p


def news_classifier_forward(params, input_ids, attention_mask, cfg=CFG):
    b, s = input_ids.shape
    h = cfg["hidden"]

    # ---- embeddings: table gathers stay in XLA (no clean Pallas equivalent);
    #      the embedding LayerNorm is fused into the first layer kernel. ----
    pos_ids = jnp.arange(s)
    emb = (jnp.take(params["word_emb"], input_ids, axis=0)
           + params["pos_emb"][pos_ids][None, :, :]
           + params["type_emb"][0][None, None, :])
    x = emb.astype(jnp.bfloat16)                         # (B, S, H)

    # Raw mask, broadcast/added inside each layer kernel.
    mask3 = attention_mask.astype(jnp.float32).reshape(b, 1, s)

    emb_ln = (params["emb_ln_g"], params["emb_ln_b"])
    head = (params["pool_w"], params["pool_b"], params["out_w"], params["out_b"])
    n_layers = len(params["layers"])

    # ---- encoder: one fused, batch-gridded Pallas kernel per layer ----
    for li, lp in enumerate(params["layers"]):
        x = encoder_layer(
            x, mask3, lp, cfg,
            emb_ln=emb_ln if li == 0 else None,
            head=head if li == n_layers - 1 else None)

    # Last layer already produced softmax class probabilities: (B, 1, C).
    return x.reshape(b, cfg["n_classes"])


# ---------------------------------- main ----------------------------------

if __name__ == "__main__":
    key = jax.random.PRNGKey(0)
    k_param, k_ids = jax.random.split(key)

    params = init_params(k_param, CFG)

    batch, seq = 2, 8
    input_ids = jax.random.randint(k_ids, (batch, seq), 0, CFG["vocab_size"],
                                   dtype=jnp.int32)
    attention_mask = jnp.concatenate(
        [jnp.ones((batch, seq - 2), jnp.int32), jnp.zeros((batch, 2), jnp.int32)],
        axis=1)

    fwd = jax.jit(news_classifier_forward)
    probs = jax.block_until_ready(fwd(params, input_ids, attention_mask))

    assert probs.shape == (batch, CFG["n_classes"])
    assert bool(jnp.all(jnp.isfinite(probs)))
    assert bool(jnp.allclose(jnp.sum(probs, axis=1), 1.0, atol=1e-5))
    print("KERNEL_OK")
</pallas_src>

<mosaic_0001>
module attributes {stable_mosaic.version = 11 : i64} {
  func.func @_encoder_layer_kernel(%arg0: i32, %arg1: memref<1x8x32xbf16, #tpu.memory_space<vmem>>, %arg2: memref<1x1x8xf32, #tpu.memory_space<vmem>>, %arg3: memref<32x96xbf16, #tpu.memory_space<vmem>>, %arg4: memref<1x96xf32, #tpu.memory_space<vmem>>, %arg5: memref<32x32xbf16, #tpu.memory_space<vmem>>, %arg6: memref<1x32xf32, #tpu.memory_space<vmem>>, %arg7: memref<1x32xf32, #tpu.memory_space<vmem>>, %arg8: memref<1x32xf32, #tpu.memory_space<vmem>>, %arg9: memref<32x64xbf16, #tpu.memory_space<vmem>>, %arg10: memref<1x64xf32, #tpu.memory_space<vmem>>, %arg11: memref<64x32xbf16, #tpu.memory_space<vmem>>, %arg12: memref<1x32xf32, #tpu.memory_space<vmem>>, %arg13: memref<1x32xf32, #tpu.memory_space<vmem>>, %arg14: memref<1x32xf32, #tpu.memory_space<vmem>>, %arg15: memref<32x32xbf16, #tpu.memory_space<vmem>>, %arg16: memref<1x32xf32, #tpu.memory_space<vmem>>, %arg17: memref<32x4xbf16, #tpu.memory_space<vmem>>, %arg18: memref<1x4xf32, #tpu.memory_space<vmem>>, %arg19: memref<1x1x4xf32, #tpu.memory_space<vmem>>) attributes {dimension_semantics = [#tpu.dimension_semantics<parallel>], iteration_bounds = array<i64: 2>, scalar_prefetch = 0 : i64, scratch_operands = 0 : i64, tpu.core_type = #tpu.core_type<tc>, window_params = [{transform_indices = @transform_0, window_bounds = array<i64: 1, 8, 32>}, {transform_indices = @transform_1, window_bounds = array<i64: 1, 1, 8>}, {pipeline_mode = #tpu.pipeline_mode<synchronous>, transform_indices = @transform_2, window_bounds = array<i64: 32, 96>}, {pipeline_mode = #tpu.pipeline_mode<synchronous>, transform_indices = @transform_3, window_bounds = array<i64: 1, 96>}, {pipeline_mode = #tpu.pipeline_mode<synchronous>, transform_indices = @transform_4, window_bounds = array<i64: 32, 32>}, {pipeline_mode = #tpu.pipeline_mode<synchronous>, transform_indices = @transform_5, window_bounds = array<i64: 1, 32>}, {pipeline_mode = #tpu.pipeline_mode<synchronous>, transform_indices = @transform_6, window_bounds = array<i64: 1, 32>}, {pipeline_mode = #tpu.pipeline_mode<synchronous>, transform_indices = @transform_7, window_bounds = array<i64: 1, 32>}, {pipeline_mode = #tpu.pipeline_mode<synchronous>, transform_indices = @transform_8, window_bounds = array<i64: 32, 64>}, {pipeline_mode = #tpu.pipeline_mode<synchronous>, transform_indices = @transform_9, window_bounds = array<i64: 1, 64>}, {pipeline_mode = #tpu.pipeline_mode<synchronous>, transform_indices = @transform_10, window_bounds = array<i64: 64, 32>}, {pipeline_mode = #tpu.pipeline_mode<synchronous>, transform_indices = @transform_11, window_bounds = array<i64: 1, 32>}, {pipeline_mode = #tpu.pipeline_mode<synchronous>, transform_indices = @transform_12, window_bounds = array<i64: 1, 32>}, {pipeline_mode = #tpu.pipeline_mode<synchronous>, transform_indices = @transform_13, window_bounds = array<i64: 1, 32>}, {pipeline_mode = #tpu.pipeline_mode<synchronous>, transform_indices = @transform_14, window_bounds = array<i64: 32, 32>}, {pipeline_mode = #tpu.pipeline_mode<synchronous>, transform_indices = @transform_15, window_bounds = array<i64: 1, 32>}, {pipeline_mode = #tpu.pipeline_mode<synchronous>, transform_indices = @transform_16, window_bounds = array<i64: 32, 4>}, {pipeline_mode = #tpu.pipeline_mode<synchronous>, transform_indices = @transform_17, window_bounds = array<i64: 1, 4>}, {transform_indices = @transform_18, window_bounds = array<i64: 1, 1, 4>}]} {
    %c0 = arith.constant 0 : index
    %c0_0 = arith.constant 0 : index
    %c0_1 = arith.constant 0 : index
    %0 = vector.load %arg1[%c0, %c0_0, %c0_1] : memref<1x8x32xbf16, #tpu.memory_space<vmem>>, vector<1x8x32xbf16>
    %1 = vector.shape_cast %0 : vector<1x8x32xbf16> to vector<8x32xbf16>
    %2 = arith.extf %1 : vector<8x32xbf16> to vector<8x32xf32>
    %3 = arith.truncf %2 : vector<8x32xf32> to vector<8x32xbf16>
    %c0_2 = arith.constant 0 : index
    %c0_3 = arith.constant 0 : index
    %4 = vector.load %arg3[%c0_2, %c0_3] : memref<32x96xbf16, #tpu.memory_space<vmem>>, vector<32x96xbf16>
    %cst = arith.constant dense<0.000000e+00> : vector<8x96xf32>
    %5 = tpu.matmul %3, %4, %cst {dimension_numbers = #tpu.dot_dimension_numbers<[1], [0], [0], [1], [0, 0, 1, 1], [], []>} : vector<8x32xbf16>, vector<32x96xbf16>, vector<8x96xf32> -> vector<8x96xf32>
    %c0_4 = arith.constant 0 : index
    %c0_5 = arith.constant 0 : index
    %6 = vector.load %arg4[%c0_4, %c0_5] : memref<1x96xf32, #tpu.memory_space<vmem>>, vector<1x96xf32>
    %7 = vector.broadcast %6 : vector<1x96xf32> to vector<8x96xf32>
    %8 = arith.addf %5, %7 : vector<8x96xf32>
    %c0_6 = arith.constant 0 : index
    %c0_7 = arith.constant 0 : index
    %c0_8 = arith.constant 0 : index
    %9 = vector.load %arg2[%c0_6, %c0_7, %c0_8] : memref<1x1x8xf32, #tpu.memory_space<vmem>>, vector<1x1x8xf32>
    %10 = vector.shape_cast %9 : vector<1x1x8xf32> to vector<1x8xf32>
    %cst_9 = arith.constant 1.000000e+00 : f32
    %11 = vector.broadcast %cst_9 : f32 to vector<1x8xf32>
    %12 = arith.subf %11, %10 : vector<1x8xf32>
    %cst_10 = arith.constant -1.000000e+04 : f32
    %13 = vector.broadcast %cst_10 : f32 to vector<1x8xf32>
    %14 = arith.mulf %12, %13 : vector<1x8xf32>
    %15 = vector.extract_strided_slice %8 {offsets = [0, 0], sizes = [8, 8], strides = [1, 1]} : vector<8x96xf32> to vector<8x8xf32>
    %16 = arith.truncf %15 : vector<8x8xf32> to vector<8x8xbf16>
    %17 = vector.extract_strided_slice %8 {offsets = [0, 32], sizes = [8, 8], strides = [1, 1]} : vector<8x96xf32> to vector<8x8xf32>
    %18 = arith.truncf %17 : vector<8x8xf32> to vector<8x8xbf16>
    %19 = vector.extract_strided_slice %8 {offsets = [0, 64], sizes = [8, 8], strides = [1, 1]} : vector<8x96xf32> to vector<8x8xf32>
    %20 = arith.truncf %19 : vector<8x8xf32> to vector<8x8xbf16>
    "tpu.trace_start"() <{level = 10 : i32, message = "qd,kd->qk"}> : () -> ()
    %cst_11 = arith.constant dense<0.000000e+00> : vector<8x8xf32>
    %21 = tpu.matmul %16, %18, %cst_11 {dimension_numbers = #tpu.dot_dimension_numbers<[1], [1], [0], [0], [0, 0, 1, 0], [], []>} : vector<8x8xbf16>, vector<8x8xbf16>, vector<8x8xf32> -> vector<8x8xf32>
    "tpu.trace_stop"() : () -> ()
    %cst_12 = arith.constant 0.353553385 : f32
    %22 = vector.broadcast %cst_12 : f32 to vector<8x8xf32>
    %23 = arith.mulf %21, %22 : vector<8x8xf32>
    %24 = vector.broadcast %14 : vector<1x8xf32> to vector<8x8xf32>
    %25 = arith.addf %23, %24 : vector<8x8xf32>
    %cst_13 = arith.constant dense<0xFF800000> : vector<8xf32>
    %26 = vector.multi_reduction <maximumf>, %25, %cst_13 [1] : vector<8x8xf32> to vector<8xf32>
    %27 = vector.shape_cast %26 : vector<8xf32> to vector<8x1xf32>
    %28 = vector.broadcast %27 : vector<8x1xf32> to vector<8x8xf32>
    %29 = arith.subf %25, %28 : vector<8x8xf32>
    %30 = math.exp %29 : vector<8x8xf32>
    %cst_14 = arith.constant dense<0.000000e+00> : vector<8xf32>
    %31 = vector.multi_reduction <add>, %30, %cst_14 [1] : vector<8x8xf32> to vector<8xf32>
    %32 = vector.shape_cast %31 : vector<8xf32> to vector<8x1xf32>
    %33 = tpu.reciprocal %32 {approx = true} : vector<8x1xf32> -> vector<8x1xf32>
    %34 = vector.broadcast %33 : vector<8x1xf32> to vector<8x8xf32>
    %35 = arith.mulf %30, %34 : vector<8x8xf32>
    %36 = arith.truncf %35 : vector<8x8xf32> to vector<8x8xbf16>
    %cst_15 = arith.constant dense<0.000000e+00> : vector<8x8xf32>
    %37 = tpu.matmul %36, %20, %cst_15 {dimension_numbers = #tpu.dot_dimension_numbers<[1], [0], [0], [1], [0, 0, 1, 1], [], []>} : vector<8x8xbf16>, vector<8x8xbf16>, vector<8x8xf32> -> vector<8x8xf32>
    %38 = vector.extract_strided_slice %8 {offsets = [0, 8], sizes = [8, 8], strides = [1, 1]} : vector<8x96xf32> to vector<8x8xf32>
    %39 = arith.truncf %38 : vector<8x8xf32> to vector<8x8xbf16>
    %40 = vector.extract_strided_slice %8 {offsets = [0, 40], sizes = [8, 8], strides = [1, 1]} : vector<8x96xf32> to vector<8x8xf32>
    %41 = arith.truncf %40 : vector<8x8xf32> to vector<8x8xbf16>
    %42 = vector.extract_strided_slice %8 {offsets = [0, 72], sizes = [8, 8], strides = [1, 1]} : vector<8x96xf32> to vector<8x8xf32>
    %43 = arith.truncf %42 : vector<8x8xf32> to vector<8x8xbf16>
    "tpu.trace_start"() <{level = 10 : i32, message = "qd,kd->qk"}> : () -> ()
    %cst_16 = arith.constant dense<0.000000e+00> : vector<8x8xf32>
    %44 = tpu.matmul %39, %41, %cst_16 {dimension_numbers = #tpu.dot_dimension_numbers<[1], [1], [0], [0], [0, 0, 1, 0], [], []>} : vector<8x8xbf16>, vector<8x8xbf16>, vector<8x8xf32> -> vector<8x8xf32>
    "tpu.trace_stop"() : () -> ()
    %cst_17 = arith.constant 0.353553385 : f32
    %45 = vector.broadcast %cst_17 : f32 to vector<8x8xf32>
    %46 = arith.mulf %44, %45 : vector<8x8xf32>
    %47 = vector.broadcast %14 : vector<1x8xf32> to vector<8x8xf32>
    %48 = arith.addf %46, %47 : vector<8x8xf32>
    %cst_18 = arith.constant dense<0xFF800000> : vector<8xf32>
    %49 = vector.multi_reduction <maximumf>, %48, %cst_18 [1] : vector<8x8xf32> to vector<8xf32>
    %50 = vector.shape_cast %49 : vector<8xf32> to vector<8x1xf32>
    %51 = vector.broadcast %50 : vector<8x1xf32> to vector<8x8xf32>
    %52 = arith.subf %48, %51 : vector<8x8xf32>
    %53 = math.exp %52 : vector<8x8xf32>
    %cst_19 = arith.constant dense<0.000000e+00> : vector<8xf32>
    %54 = vector.multi_reduction <add>, %53, %cst_19 [1] : vector<8x8xf32> to vector<8xf32>
    %55 = vector.shape_cast %54 : vector<8xf32> to vector<8x1xf32>
    %56 = tpu.reciprocal %55 {approx = true} : vector<8x1xf32> -> vector<8x1xf32>
    %57 = vector.broadcast %56 : vector<8x1xf32> to vector<8x8xf32>
    %58 = arith.mulf %53, %57 : vector<8x8xf32>
    %59 = arith.truncf %58 : vector<8x8xf32> to vector<8x8xbf16>
    %cst_20 = arith.constant dense<0.000000e+00> : vector<8x8xf32>
    %60 = tpu.matmul %59, %43, %cst_20 {dimension_numbers = #tpu.dot_dimension_numbers<[1], [0], [0], [1], [0, 0, 1, 1], [], []>} : vector<8x8xbf16>, vector<8x8xbf16>, vector<8x8xf32> -> vector<8x8xf32>
    %61 = vector.extract_strided_slice %8 {offsets = [0, 16], sizes = [8, 8], strides = [1, 1]} : vector<8x96xf32> to vector<8x8xf32>
    %62 = arith.truncf %61 : vector<8x8xf32> to vector<8x8xbf16>
    %63 = vector.extract_strided_slice %8 {offsets = [0, 48], sizes = [8, 8], strides = [1, 1]} : vector<8x96xf32> to vector<8x8xf32>
    %64 = arith.truncf %63 : vector<8x8xf32> to vector<8x8xbf16>
    %65 = vector.extract_strided_slice %8 {offsets = [0, 80], sizes = [8, 8], strides = [1, 1]} : vector<8x96xf32> to vector<8x8xf32>
    %66 = arith.truncf %65 : vector<8x8xf32> to vector<8x8xbf16>
    "tpu.trace_start"() <{level = 10 : i32, message = "qd,kd->qk"}> : () -> ()
    %cst_21 = arith.constant dense<0.000000e+00> : vector<8x8xf32>
    %67 = tpu.matmul %62, %64, %cst_21 {dimension_numbers = #tpu.dot_dimension_numbers<[1], [1], [0], [0], [0, 0, 1, 0], [], []>} : vector<8x8xbf16>, vector<8x8xbf16>, vector<8x8xf32> -> vector<8x8xf32>
    "tpu.trace_stop"() : () -> ()
    %cst_22 = arith.constant 0.353553385 : f32
    %68 = vector.broadcast %cst_22 : f32 to vector<8x8xf32>
    %69 = arith.mulf %67, %68 : vector<8x8xf32>
    %70 = vector.broadcast %14 : vector<1x8xf32> to vector<8x8xf32>
    %71 = arith.addf %69, %70 : vector<8x8xf32>
    %cst_23 = arith.constant dense<0xFF800000> : vector<8xf32>
    %72 = vector.multi_reduction <maximumf>, %71, %cst_23 [1] : vector<8x8xf32> to vector<8xf32>
    %73 = vector.shape_cast %72 : vector<8xf32> to vector<8x1xf32>
    %74 = vector.broadcast %73 : vector<8x1xf32> to vector<8x8xf32>
    %75 = arith.subf %71, %74 : vector<8x8xf32>
    %76 = math.exp %75 : vector<8x8xf32>
    %cst_24 = arith.constant dense<0.000000e+00> : vector<8xf32>
    %77 = vector.multi_reduction <add>, %76, %cst_24 [1] : vector<8x8xf32> to vector<8xf32>
    %78 = vector.shape_cast %77 : vector<8xf32> to vector<8x1xf32>
    %79 = tpu.reciprocal %78 {approx = true} : vector<8x1xf32> -> vector<8x1xf32>
    %80 = vector.broadcast %79 : vector<8x1xf32> to vector<8x8xf32>
    %81 = arith.mulf %76, %80 : vector<8x8xf32>
    %82 = arith.truncf %81 : vector<8x8xf32> to vector<8x8xbf16>
    %cst_25 = arith.constant dense<0.000000e+00> : vector<8x8xf32>
    %83 = tpu.matmul %82, %66, %cst_25 {dimension_numbers = #tpu.dot_dimension_numbers<[1], [0], [0], [1], [0, 0, 1, 1], [], []>} : vector<8x8xbf16>, vector<8x8xbf16>, vector<8x8xf32> -> vector<8x8xf32>
    %84 = vector.extract_strided_slice %8 {offsets = [0, 24], sizes = [8, 8], strides = [1, 1]} : vector<8x96xf32> to vector<8x8xf32>
    %85 = arith.truncf %84 : vector<8x8xf32> to vector<8x8xbf16>
    %86 = vector.extract_strided_slice %8 {offsets = [0, 56], sizes = [8, 8], strides = [1, 1]} : vector<8x96xf32> to vector<8x8xf32>
    %87 = arith.truncf %86 : vector<8x8xf32> to vector<8x8xbf16>
    %88 = vector.extract_strided_slice %8 {offsets = [0, 88], sizes = [8, 8], strides = [1, 1]} : vector<8x96xf32> to vector<8x8xf32>
    %89 = arith.truncf %88 : vector<8x8xf32> to vector<8x8xbf16>
    "tpu.trace_start"() <{level = 10 : i32, message = "qd,kd->qk"}> : () -> ()
    %cst_26 = arith.constant dense<0.000000e+00> : vector<8x8xf32>
    %90 = tpu.matmul %85, %87, %cst_26 {dimension_numbers = #tpu.dot_dimension_numbers<[1], [1], [0], [0], [0, 0, 1, 0], [], []>} : vector<8x8xbf16>, vector<8x8xbf16>, vector<8x8xf32> -> vector<8x8xf32>
    "tpu.trace_stop"() : () -> ()
    %cst_27 = arith.constant 0.353553385 : f32
    %91 = vector.broadcast %cst_27 : f32 to vector<8x8xf32>
    %92 = arith.mulf %90, %91 : vector<8x8xf32>
    %93 = vector.broadcast %14 : vector<1x8xf32> to vector<8x8xf32>
    %94 = arith.addf %92, %93 : vector<8x8xf32>
    %cst_28 = arith.constant dense<0xFF800000> : vector<8xf32>
    %95 = vector.multi_reduction <maximumf>, %94, %cst_28 [1] : vector<8x8xf32> to vector<8xf32>
    %96 = vector.shape_cast %95 : vector<8xf32> to vector<8x1xf32>
    %97 = vector.broadcast %96 : vector<8x1xf32> to vector<8x8xf32>
    %98 = arith.subf %94, %97 : vector<8x8xf32>
    %99 = math.exp %98 : vector<8x8xf32>
    %cst_29 = arith.constant dense<0.000000e+00> : vector<8xf32>
    %100 = vector.multi_reduction <add>, %99, %cst_29 [1] : vector<8x8xf32> to vector<8xf32>
    %101 = vector.shape_cast %100 : vector<8xf32> to vector<8x1xf32>
    %102 = tpu.reciprocal %101 {approx = true} : vector<8x1xf32> -> vector<8x1xf32>
    %103 = vector.broadcast %102 : vector<8x1xf32> to vector<8x8xf32>
    %104 = arith.mulf %99, %103 : vector<8x8xf32>
    %105 = arith.truncf %104 : vector<8x8xf32> to vector<8x8xbf16>
    %cst_30 = arith.constant dense<0.000000e+00> : vector<8x8xf32>
    %106 = tpu.matmul %105, %89, %cst_30 {dimension_numbers = #tpu.dot_dimension_numbers<[1], [0], [0], [1], [0, 0, 1, 1], [], []>} : vector<8x8xbf16>, vector<8x8xbf16>, vector<8x8xf32> -> vector<8x8xf32>
    %107 = tpu.concatenate %37, %60, %83, %106 in 1 : vector<8x8xf32>, vector<8x8xf32>, vector<8x8xf32>, vector<8x8xf32> -> vector<8x32xf32>
    %108 = arith.truncf %107 : vector<8x32xf32> to vector<8x32xbf16>
    %c0_31 = arith.constant 0 : index
    %c0_32 = arith.constant 0 : index
    %109 = vector.load %arg5[%c0_31, %c0_32] : memref<32x32xbf16, #tpu.memory_space<vmem>>, vector<32x32xbf16>
    %cst_33 = arith.constant dense<0.000000e+00> : vector<8x32xf32>
    %110 = tpu.matmul %108, %109, %cst_33 {dimension_numbers = #tpu.dot_dimension_numbers<[1], [0], [0], [1], [0, 0, 1, 1], [], []>} : vector<8x32xbf16>, vector<32x32xbf16>, vector<8x32xf32> -> vector<8x32xf32>
    %c0_34 = arith.constant 0 : index
    %c0_35 = arith.constant 0 : index
    %111 = vector.load %arg6[%c0_34, %c0_35] : memref<1x32xf32, #tpu.memory_space<vmem>>, vector<1x32xf32>
    %112 = vector.broadcast %111 : vector<1x32xf32> to vector<8x32xf32>
    %113 = arith.addf %110, %112 : vector<8x32xf32>
    %114 = arith.addf %113, %2 : vector<8x32xf32>
    %c0_36 = arith.constant 0 : index
    %c0_37 = arith.constant 0 : index
    %115 = vector.load %arg7[%c0_36, %c0_37] : memref<1x32xf32, #tpu.memory_space<vmem>>, vector<1x32xf32>
    %c0_38 = arith.constant 0 : index
    %c0_39 = arith.constant 0 : index
    %116 = vector.load %arg8[%c0_38, %c0_39] : memref<1x32xf32, #tpu.memory_space<vmem>>, vector<1x32xf32>
    %cst_40 = arith.constant dense<0.000000e+00> : vector<8xf32>
    %117 = vector.multi_reduction <add>, %114, %cst_40 [1] : vector<8x32xf32> to vector<8xf32>
    %118 = vector.shape_cast %117 : vector<8xf32> to vector<8x1xf32>
    %cst_41 = arith.constant 3.200000e+01 : f32
    %119 = vector.broadcast %cst_41 : f32 to vector<8x1xf32>
    %120 = arith.divf %118, %119 : vector<8x1xf32>
    %121 = vector.broadcast %120 : vector<8x1xf32> to vector<8x32xf32>
    %122 = arith.subf %114, %121 : vector<8x32xf32>
    %123 = vector.broadcast %120 : vector<8x1xf32> to vector<8x32xf32>
    %124 = arith.subf %114, %123 : vector<8x32xf32>
    %125 = arith.mulf %122, %124 : vector<8x32xf32>
    %cst_42 = arith.constant dense<0.000000e+00> : vector<8xf32>
    %126 = vector.multi_reduction <add>, %125, %cst_42 [1] : vector<8x32xf32> to vector<8xf32>
    %127 = vector.shape_cast %126 : vector<8xf32> to vector<8x1xf32>
    %cst_43 = arith.constant 3.200000e+01 : f32
    %128 = vector.broadcast %cst_43 : f32 to vector<8x1xf32>
    %129 = arith.divf %127, %128 : vector<8x1xf32>
    %130 = vector.broadcast %120 : vector<8x1xf32> to vector<8x32xf32>
    %131 = arith.subf %114, %130 : vector<8x32xf32>
    %cst_44 = arith.constant 9.99999996E-13 : f32
    %132 = vector.broadcast %cst_44 : f32 to vector<8x1xf32>
    %133 = arith.addf %129, %132 : vector<8x1xf32>
    %134 = math.rsqrt %133 : vector<8x1xf32>
    %135 = vector.broadcast %134 : vector<8x1xf32> to vector<8x32xf32>
    %136 = arith.mulf %131, %135 : vector<8x32xf32>
    %137 = vector.broadcast %115 : vector<1x32xf32> to vector<8x32xf32>
    %138 = arith.mulf %136, %137 : vector<8x32xf32>
    %139 = vector.broadcast %116 : vector<1x32xf32> to vector<8x32xf32>
    %140 = arith.addf %138, %139 : vector<8x32xf32>
    %141 = arith.truncf %140 : vector<8x32xf32> to vector<8x32xbf16>
    %c0_45 = arith.constant 0 : index
    %c0_46 = arith.constant 0 : index
    %142 = vector.load %arg9[%c0_45, %c0_46] : memref<32x64xbf16, #tpu.memory_space<vmem>>, vector<32x64xbf16>
    %cst_47 = arith.constant dense<0.000000e+00> : vector<8x64xf32>
    %143 = tpu.matmul %141, %142, %cst_47 {dimension_numbers = #tpu.dot_dimension_numbers<[1], [0], [0], [1], [0, 0, 1, 1], [], []>} : vector<8x32xbf16>, vector<32x64xbf16>, vector<8x64xf32> -> vector<8x64xf32>
    %c0_48 = arith.constant 0 : index
    %c0_49 = arith.constant 0 : index
    %144 = vector.load %arg10[%c0_48, %c0_49] : memref<1x64xf32, #tpu.memory_space<vmem>>, vector<1x64xf32>
    %145 = vector.broadcast %144 : vector<1x64xf32> to vector<8x64xf32>
    %146 = arith.addf %143, %145 : vector<8x64xf32>
    %cst_50 = arith.constant 5.000000e-01 : f32
    %147 = vector.broadcast %cst_50 : f32 to vector<8x64xf32>
    %148 = arith.mulf %147, %146 : vector<8x64xf32>
    %cst_51 = arith.constant 4.471500e-02 : f32
    %149 = vector.broadcast %cst_51 : f32 to vector<8x64xf32>
    %150 = arith.mulf %149, %146 : vector<8x64xf32>
    %151 = arith.mulf %150, %146 : vector<8x64xf32>
    %152 = arith.mulf %151, %146 : vector<8x64xf32>
    %153 = arith.addf %146, %152 : vector<8x64xf32>
    %cst_52 = arith.constant 0.797884583 : f32
    %154 = vector.broadcast %cst_52 : f32 to vector<8x64xf32>
    %155 = arith.mulf %154, %153 : vector<8x64xf32>
    %156 = math.tanh %155 : vector<8x64xf32>
    %cst_53 = arith.constant 1.000000e+00 : f32
    %157 = vector.broadcast %cst_53 : f32 to vector<8x64xf32>
    %158 = arith.addf %157, %156 : vector<8x64xf32>
    %159 = arith.mulf %148, %158 : vector<8x64xf32>
    %160 = arith.truncf %159 : vector<8x64xf32> to vector<8x64xbf16>
    %c0_54 = arith.constant 0 : index
    %c0_55 = arith.constant 0 : index
    %161 = vector.load %arg11[%c0_54, %c0_55] : memref<64x32xbf16, #tpu.memory_space<vmem>>, vector<64x32xbf16>
    %cst_56 = arith.constant dense<0.000000e+00> : vector<8x32xf32>
    %162 = tpu.matmul %160, %161, %cst_56 {dimension_numbers = #tpu.dot_dimension_numbers<[1], [0], [0], [1], [0, 0, 1, 1], [], []>} : vector<8x64xbf16>, vector<64x32xbf16>, vector<8x32xf32> -> vector<8x32xf32>
    %c0_57 = arith.constant 0 : index
    %c0_58 = arith.constant 0 : index
    %163 = vector.load %arg12[%c0_57, %c0_58] : memref<1x32xf32, #tpu.memory_space<vmem>>, vector<1x32xf32>
    %164 = vector.broadcast %163 : vector<1x32xf32> to vector<8x32xf32>
    %165 = arith.addf %162, %164 : vector<8x32xf32>
    %166 = arith.addf %165, %140 : vector<8x32xf32>
    %c0_59 = arith.constant 0 : index
    %c0_60 = arith.constant 0 : index
    %167 = vector.load %arg13[%c0_59, %c0_60] : memref<1x32xf32, #tpu.memory_space<vmem>>, vector<1x32xf32>
    %c0_61 = arith.constant 0 : index
    %c0_62 = arith.constant 0 : index
    %168 = vector.load %arg14[%c0_61, %c0_62] : memref<1x32xf32, #tpu.memory_space<vmem>>, vector<1x32xf32>
    %cst_63 = arith.constant dense<0.000000e+00> : vector<8xf32>
    %169 = vector.multi_reduction <add>, %166, %cst_63 [1] : vector<8x32xf32> to vector<8xf32>
    %170 = vector.shape_cast %169 : vector<8xf32> to vector<8x1xf32>
    %cst_64 = arith.constant 3.200000e+01 : f32
    %171 = vector.broadcast %cst_64 : f32 to vector<8x1xf32>
    %172 = arith.divf %170, %171 : vector<8x1xf32>
    %173 = vector.broadcast %172 : vector<8x1xf32> to vector<8x32xf32>
    %174 = arith.subf %166, %173 : vector<8x32xf32>
    %175 = vector.broadcast %172 : vector<8x1xf32> to vector<8x32xf32>
    %176 = arith.subf %166, %175 : vector<8x32xf32>
    %177 = arith.mulf %174, %176 : vector<8x32xf32>
    %cst_65 = arith.constant dense<0.000000e+00> : vector<8xf32>
    %178 = vector.multi_reduction <add>, %177, %cst_65 [1] : vector<8x32xf32> to vector<8xf32>
    %179 = vector.shape_cast %178 : vector<8xf32> to vector<8x1xf32>
    %cst_66 = arith.constant 3.200000e+01 : f32
    %180 = vector.broadcast %cst_66 : f32 to vector<8x1xf32>
    %181 = arith.divf %179, %180 : vector<8x1xf32>
    %182 = vector.broadcast %172 : vector<8x1xf32> to vector<8x32xf32>
    %183 = arith.subf %166, %182 : vector<8x32xf32>
    %cst_67 = arith.constant 9.99999996E-13 : f32
    %184 = vector.broadcast %cst_67 : f32 to vector<8x1xf32>
    %185 = arith.addf %181, %184 : vector<8x1xf32>
    %186 = math.rsqrt %185 : vector<8x1xf32>
    %187 = vector.broadcast %186 : vector<8x1xf32> to vector<8x32xf32>
    %188 = arith.mulf %183, %187 : vector<8x32xf32>
    %189 = vector.broadcast %167 : vector<1x32xf32> to vector<8x32xf32>
    %190 = arith.mulf %188, %189 : vector<8x32xf32>
    %191 = vector.broadcast %168 : vector<1x32xf32> to vector<8x32xf32>
    %192 = arith.addf %190, %191 : vector<8x32xf32>
    %193 = vector.extract_strided_slice %192 {offsets = [0, 0], sizes = [1, 32], strides = [1, 1]} : vector<8x32xf32> to vector<1x32xf32>
    %194 = arith.truncf %193 : vector<1x32xf32> to vector<1x32xbf16>
    %c0_68 = arith.constant 0 : index
    %c0_69 = arith.constant 0 : index
    %195 = vector.load %arg15[%c0_68, %c0_69] : memref<32x32xbf16, #tpu.memory_space<vmem>>, vector<32x32xbf16>
    %cst_70 = arith.constant dense<0.000000e+00> : vector<1x32xf32>
    %196 = tpu.matmul %194, %195, %cst_70 {dimension_numbers = #tpu.dot_dimension_numbers<[1], [0], [0], [1], [0, 0, 1, 1], [], []>} : vector<1x32xbf16>, vector<32x32xbf16>, vector<1x32xf32> -> vector<1x32xf32>
    %c0_71 = arith.constant 0 : index
    %c0_72 = arith.constant 0 : index
    %197 = vector.load %arg16[%c0_71, %c0_72] : memref<1x32xf32, #tpu.memory_space<vmem>>, vector<1x32xf32>
    %198 = arith.addf %196, %197 : vector<1x32xf32>
    %199 = math.tanh %198 : vector<1x32xf32>
    %200 = arith.truncf %199 : vector<1x32xf32> to vector<1x32xbf16>
    %c0_73 = arith.constant 0 : index
    %c0_74 = arith.constant 0 : index
    %201 = vector.load %arg17[%c0_73, %c0_74] : memref<32x4xbf16, #tpu.memory_space<vmem>>, vector<32x4xbf16>
    %cst_75 = arith.constant dense<0.000000e+00> : vector<1x4xf32>
    %202 = tpu.matmul %200, %201, %cst_75 {dimension_numbers = #tpu.dot_dimension_numbers<[1], [0], [0], [1], [0, 0, 1, 1], [], []>} : vector<1x32xbf16>, vector<32x4xbf16>, vector<1x4xf32> -> vector<1x4xf32>
    %c0_76 = arith.constant 0 : index
    %c0_77 = arith.constant 0 : index
    %203 = vector.load %arg18[%c0_76, %c0_77] : memref<1x4xf32, #tpu.memory_space<vmem>>, vector<1x4xf32>
    %204 = arith.addf %202, %203 : vector<1x4xf32>
    %cst_78 = arith.constant dense<0xFF800000> : vector<1xf32>
    %205 = vector.multi_reduction <maximumf>, %204, %cst_78 [1] : vector<1x4xf32> to vector<1xf32>
    %206 = vector.shape_cast %205 : vector<1xf32> to vector<1x1xf32>
    %207 = vector.broadcast %206 : vector<1x1xf32> to vector<1x4xf32>
    %208 = arith.subf %204, %207 : vector<1x4xf32>
    %209 = math.exp %208 : vector<1x4xf32>
    %cst_79 = arith.constant dense<0.000000e+00> : vector<1xf32>
    %210 = vector.multi_reduction <add>, %209, %cst_79 [1] : vector<1x4xf32> to vector<1xf32>
    %211 = vector.shape_cast %210 : vector<1xf32> to vector<1x1xf32>
    %212 = vector.broadcast %211 : vector<1x1xf32> to vector<1x4xf32>
    %213 = arith.divf %209, %212 : vector<1x4xf32>
    %214 = vector.shape_cast %213 : vector<1x4xf32> to vector<1x1x4xf32>
    %c0_80 = arith.constant 0 : index
    %c0_81 = arith.constant 0 : index
    %c0_82 = arith.constant 0 : index
    %215 = vector.load %arg19[%c0_80, %c0_81, %c0_82] : memref<1x1x4xf32, #tpu.memory_space<vmem>>, vector<1x1x4xf32>
    tpu.vector_store %arg19[%c0_80, %c0_81, %c0_82], %214 {strides = array<i32>} : memref<1x1x4xf32, #tpu.memory_space<vmem>>, vector<1x1x4xf32>,
    return
  }
  func.func @transform_0(%arg0: i32) -> (i32, i32, i32) {
    %c0_i32 = arith.constant 0 : i32
    %c0_i32_0 = arith.constant 0 : i32
    %c0_i32_1 = arith.constant 0 : i32
    return %arg0, %c0_i32, %c0_i32_0 : i32, i32, i32
  }
  func.func @transform_1(%arg0: i32) -> (i32, i32, i32) {
    %c0_i32 = arith.constant 0 : i32
    %c0_i32_0 = arith.constant 0 : i32
    %c0_i32_1 = arith.constant 0 : i32
    return %arg0, %c0_i32, %c0_i32_0 : i32, i32, i32
  }
  func.func @transform_2(%arg0: i32) -> (i32, i32) {
    %c0_i32 = arith.constant 0 : i32
    %c0_i32_0 = arith.constant 0 : i32
    %c0_i32_1 = arith.constant 0 : i32
    return %c0_i32, %c0_i32_0 : i32, i32
  }
  func.func @transform_3(%arg0: i32) -> (i32, i32) {
    %c0_i32 = arith.constant 0 : i32
    %c0_i32_0 = arith.constant 0 : i32
    %c0_i32_1 = arith.constant 0 : i32
    return %c0_i32, %c0_i32_0 : i32, i32
  }
  func.func @transform_4(%arg0: i32) -> (i32, i32) {
    %c0_i32 = arith.constant 0 : i32
    %c0_i32_0 = arith.constant 0 : i32
    %c0_i32_1 = arith.constant 0 : i32
    return %c0_i32, %c0_i32_0 : i32, i32
  }
  func.func @transform_5(%arg0: i32) -> (i32, i32) {
    %c0_i32 = arith.constant 0 : i32
    %c0_i32_0 = arith.constant 0 : i32
    %c0_i32_1 = arith.constant 0 : i32
    return %c0_i32, %c0_i32_0 : i32, i32
  }
  func.func @transform_6(%arg0: i32) -> (i32, i32) {
    %c0_i32 = arith.constant 0 : i32
    %c0_i32_0 = arith.constant 0 : i32
    %c0_i32_1 = arith.constant 0 : i32
    return %c0_i32, %c0_i32_0 : i32, i32
  }
  func.func @transform_7(%arg0: i32) -> (i32, i32) {
    %c0_i32 = arith.constant 0 : i32
    %c0_i32_0 = arith.constant 0 : i32
    %c0_i32_1 = arith.constant 0 : i32
    return %c0_i32, %c0_i32_0 : i32, i32
  }
  func.func @transform_8(%arg0: i32) -> (i32, i32) {
    %c0_i32 = arith.constant 0 : i32
    %c0_i32_0 = arith.constant 0 : i32
    %c0_i32_1 = arith.constant 0 : i32
    return %c0_i32, %c0_i32_0 : i32, i32
  }
  func.func @transform_9(%arg0: i32) -> (i32, i32) {
    %c0_i32 = arith.constant 0 : i32
    %c0_i32_0 = arith.constant 0 : i32
    %c0_i32_1 = arith.constant 0 : i32
    return %c0_i32, %c0_i32_0 : i32, i32
  }
  func.func @transform_10(%arg0: i32) -> (i32, i32) {
    %c0_i32 = arith.constant 0 : i32
    %c0_i32_0 = arith.constant 0 : i32
    %c0_i32_1 = arith.constant 0 : i32
    return %c0_i32, %c0_i32_0 : i32, i32
  }
  func.func @transform_11(%arg0: i32) -> (i32, i32) {
    %c0_i32 = arith.constant 0 : i32
    %c0_i32_0 = arith.constant 0 : i32
    %c0_i32_1 = arith.constant 0 : i32
    return %c0_i32, %c0_i32_0 : i32, i32
  }
  func.func @transform_12(%arg0: i32) -> (i32, i32) {
    %c0_i32 = arith.constant 0 : i32
    %c0_i32_0 = arith.constant 0 : i32
    %c0_i32_1 = arith.constant 0 : i32
    return %c0_i32, %c0_i32_0 : i32, i32
  }
  func.func @transform_13(%arg0: i32) -> (i32, i32) {
    %c0_i32 = arith.constant 0 : i32
    %c0_i32_0 = arith.constant 0 : i32
    %c0_i32_1 = arith.constant 0 : i32
    return %c0_i32, %c0_i32_0 : i32, i32
  }
  func.func @transform_14(%arg0: i32) -> (i32, i32) {
    %c0_i32 = arith.constant 0 : i32
    %c0_i32_0 = arith.constant 0 : i32
    %c0_i32_1 = arith.constant 0 : i32
    return %c0_i32, %c0_i32_0 : i32, i32
  }
  func.func @transform_15(%arg0: i32) -> (i32, i32) {
    %c0_i32 = arith.constant 0 : i32
    %c0_i32_0 = arith.constant 0 : i32
    %c0_i32_1 = arith.constant 0 : i32
    return %c0_i32, %c0_i32_0 : i32, i32
  }
  func.func @transform_16(%arg0: i32) -> (i32, i32) {
    %c0_i32 = arith.constant 0 : i32
    %c0_i32_0 = arith.constant 0 : i32
    %c0_i32_1 = arith.constant 0 : i32
    return %c0_i32, %c0_i32_0 : i32, i32
  }
  func.func @transform_17(%arg0: i32) -> (i32, i32) {
    %c0_i32 = arith.constant 0 : i32
    %c0_i32_0 = arith.constant 0 : i32
    %c0_i32_1 = arith.constant 0 : i32
    return %c0_i32, %c0_i32_0 : i32, i32
  }
  func.func @transform_18(%arg0: i32) -> (i32, i32, i32) {
    %c0_i32 = arith.constant 0 : i32
    %c0_i32_0 = arith.constant 0 : i32
    %c0_i32_1 = arith.constant 0 : i32
    return %arg0, %c0_i32, %c0_i32_0 : i32, i32, i32
  }
}

module attributes {stable_mosaic.version = 11 : i64} {
  func.func @_encoder_layer_kernel(%arg0: i32, %arg1: memref<1x8x32xbf16, #tpu.memory_space<vmem>>, %arg2: memref<1x1x8xf32, #tpu.memory_space<vmem>>, %arg3: memref<1x32xf32, #tpu.memory_space<vmem>>, %arg4: memref<1x32xf32, #tpu.memory_space<vmem>>, %arg5: memref<32x96xbf16, #tpu.memory_space<vmem>>, %arg6: memref<1x96xf32, #tpu.memory_space<vmem>>, %arg7: memref<32x32xbf16, #tpu.memory_space<vmem>>, %arg8: memref<1x32xf32, #tpu.memory_space<vmem>>, %arg9: memref<1x32xf32, #tpu.memory_space<vmem>>, %arg10: memref<1x32xf32, #tpu.memory_space<vmem>>, %arg11: memref<32x64xbf16, #tpu.memory_space<vmem>>, %arg12: memref<1x64xf32, #tpu.memory_space<vmem>>, %arg13: memref<64x32xbf16, #tpu.memory_space<vmem>>, %arg14: memref<1x32xf32, #tpu.memory_space<vmem>>, %arg15: memref<1x32xf32, #tpu.memory_space<vmem>>, %arg16: memref<1x32xf32, #tpu.memory_space<vmem>>, %arg17: memref<1x8x32xbf16, #tpu.memory_space<vmem>>) attributes {dimension_semantics = [#tpu.dimension_semantics<parallel>], iteration_bounds = array<i64: 2>, scalar_prefetch = 0 : i64, scratch_operands = 0 : i64, tpu.core_type = #tpu.core_type<tc>, window_params = [{transform_indices = @transform_0, window_bounds = array<i64: 1, 8, 32>}, {transform_indices = @transform_1, window_bounds = array<i64: 1, 1, 8>}, {pipeline_mode = #tpu.pipeline_mode<synchronous>, transform_indices = @transform_2, window_bounds = array<i64: 1, 32>}, {pipeline_mode = #tpu.pipeline_mode<synchronous>, transform_indices = @transform_3, window_bounds = array<i64: 1, 32>}, {pipeline_mode = #tpu.pipeline_mode<synchronous>, transform_indices = @transform_4, window_bounds = array<i64: 32, 96>}, {pipeline_mode = #tpu.pipeline_mode<synchronous>, transform_indices = @transform_5, window_bounds = array<i64: 1, 96>}, {pipeline_mode = #tpu.pipeline_mode<synchronous>, transform_indices = @transform_6, window_bounds = array<i64: 32, 32>}, {pipeline_mode = #tpu.pipeline_mode<synchronous>, transform_indices = @transform_7, window_bounds = array<i64: 1, 32>}, {pipeline_mode = #tpu.pipeline_mode<synchronous>, transform_indices = @transform_8, window_bounds = array<i64: 1, 32>}, {pipeline_mode = #tpu.pipeline_mode<synchronous>, transform_indices = @transform_9, window_bounds = array<i64: 1, 32>}, {pipeline_mode = #tpu.pipeline_mode<synchronous>, transform_indices = @transform_10, window_bounds = array<i64: 32, 64>}, {pipeline_mode = #tpu.pipeline_mode<synchronous>, transform_indices = @transform_11, window_bounds = array<i64: 1, 64>}, {pipeline_mode = #tpu.pipeline_mode<synchronous>, transform_indices = @transform_12, window_bounds = array<i64: 64, 32>}, {pipeline_mode = #tpu.pipeline_mode<synchronous>, transform_indices = @transform_13, window_bounds = array<i64: 1, 32>}, {pipeline_mode = #tpu.pipeline_mode<synchronous>, transform_indices = @transform_14, window_bounds = array<i64: 1, 32>}, {pipeline_mode = #tpu.pipeline_mode<synchronous>, transform_indices = @transform_15, window_bounds = array<i64: 1, 32>}, {transform_indices = @transform_16, window_bounds = array<i64: 1, 8, 32>}]} {
    %c0 = arith.constant 0 : index
    %c0_0 = arith.constant 0 : index
    %c0_1 = arith.constant 0 : index
    %0 = vector.load %arg1[%c0, %c0_0, %c0_1] : memref<1x8x32xbf16, #tpu.memory_space<vmem>>, vector<1x8x32xbf16>
    %1 = vector.shape_cast %0 : vector<1x8x32xbf16> to vector<8x32xbf16>
    %2 = arith.extf %1 : vector<8x32xbf16> to vector<8x32xf32>
    %c0_2 = arith.constant 0 : index
    %c0_3 = arith.constant 0 : index
    %3 = vector.load %arg3[%c0_2, %c0_3] : memref<1x32xf32, #tpu.memory_space<vmem>>, vector<1x32xf32>
    %c0_4 = arith.constant 0 : index
    %c0_5 = arith.constant 0 : index
    %4 = vector.load %arg4[%c0_4, %c0_5] : memref<1x32xf32, #tpu.memory_space<vmem>>, vector<1x32xf32>
    %cst = arith.constant dense<0.000000e+00> : vector<8xf32>
    %5 = vector.multi_reduction <add>, %2, %cst [1] : vector<8x32xf32> to vector<8xf32>
    %6 = vector.shape_cast %5 : vector<8xf32> to vector<8x1xf32>
    %cst_6 = arith.constant 3.200000e+01 : f32
    %7 = vector.broadcast %cst_6 : f32 to vector<8x1xf32>
    %8 = arith.divf %6, %7 : vector<8x1xf32>
    %9 = vector.broadcast %8 : vector<8x1xf32> to vector<8x32xf32>
    %10 = arith.subf %2, %9 : vector<8x32xf32>
    %11 = vector.broadcast %8 : vector<8x1xf32> to vector<8x32xf32>
    %12 = arith.subf %2, %11 : vector<8x32xf32>
    %13 = arith.mulf %10, %12 : vector<8x32xf32>
    %cst_7 = arith.constant dense<0.000000e+00> : vector<8xf32>
    %14 = vector.multi_reduction <add>, %13, %cst_7 [1] : vector<8x32xf32> to vector<8xf32>
    %15 = vector.shape_cast %14 : vector<8xf32> to vector<8x1xf32>
    %cst_8 = arith.constant 3.200000e+01 : f32
    %16 = vector.broadcast %cst_8 : f32 to vector<8x1xf32>
    %17 = arith.divf %15, %16 : vector<8x1xf32>
    %18 = vector.broadcast %8 : vector<8x1xf32> to vector<8x32xf32>
    %19 = arith.subf %2, %18 : vector<8x32xf32>
    %cst_9 = arith.constant 9.99999996E-13 : f32
    %20 = vector.broadcast %cst_9 : f32 to vector<8x1xf32>
    %21 = arith.addf %17, %20 : vector<8x1xf32>
    %22 = math.rsqrt %21 : vector<8x1xf32>
    %23 = vector.broadcast %22 : vector<8x1xf32> to vector<8x32xf32>
    %24 = arith.mulf %19, %23 : vector<8x32xf32>
    %25 = vector.broadcast %3 : vector<1x32xf32> to vector<8x32xf32>
    %26 = arith.mulf %24, %25 : vector<8x32xf32>
    %27 = vector.broadcast %4 : vector<1x32xf32> to vector<8x32xf32>
    %28 = arith.addf %26, %27 : vector<8x32xf32>
    %29 = arith.truncf %28 : vector<8x32xf32> to vector<8x32xbf16>
    %c0_10 = arith.constant 0 : index
    %c0_11 = arith.constant 0 : index
    %30 = vector.load %arg5[%c0_10, %c0_11] : memref<32x96xbf16, #tpu.memory_space<vmem>>, vector<32x96xbf16>
    %cst_12 = arith.constant dense<0.000000e+00> : vector<8x96xf32>
    %31 = tpu.matmul %29, %30, %cst_12 {dimension_numbers = #tpu.dot_dimension_numbers<[1], [0], [0], [1], [0, 0, 1, 1], [], []>} : vector<8x32xbf16>, vector<32x96xbf16>, vector<8x96xf32> -> vector<8x96xf32>
    %c0_13 = arith.constant 0 : index
    %c0_14 = arith.constant 0 : index
    %32 = vector.load %arg6[%c0_13, %c0_14] : memref<1x96xf32, #tpu.memory_space<vmem>>, vector<1x96xf32>
    %33 = vector.broadcast %32 : vector<1x96xf32> to vector<8x96xf32>
    %34 = arith.addf %31, %33 : vector<8x96xf32>
    %c0_15 = arith.constant 0 : index
    %c0_16 = arith.constant 0 : index
    %c0_17 = arith.constant 0 : index
    %35 = vector.load %arg2[%c0_15, %c0_16, %c0_17] : memref<1x1x8xf32, #tpu.memory_space<vmem>>, vector<1x1x8xf32>
    %36 = vector.shape_cast %35 : vector<1x1x8xf32> to vector<1x8xf32>
    %cst_18 = arith.constant 1.000000e+00 : f32
    %37 = vector.broadcast %cst_18 : f32 to vector<1x8xf32>
    %38 = arith.subf %37, %36 : vector<1x8xf32>
    %cst_19 = arith.constant -1.000000e+04 : f32
    %39 = vector.broadcast %cst_19 : f32 to vector<1x8xf32>
    %40 = arith.mulf %38, %39 : vector<1x8xf32>
    %41 = vector.extract_strided_slice %34 {offsets = [0, 0], sizes = [8, 8], strides = [1, 1]} : vector<8x96xf32> to vector<8x8xf32>
    %42 = arith.truncf %41 : vector<8x8xf32> to vector<8x8xbf16>
    %43 = vector.extract_strided_slice %34 {offsets = [0, 32], sizes = [8, 8], strides = [1, 1]} : vector<8x96xf32> to vector<8x8xf32>
    %44 = arith.truncf %43 : vector<8x8xf32> to vector<8x8xbf16>
    %45 = vector.extract_strided_slice %34 {offsets = [0, 64], sizes = [8, 8], strides = [1, 1]} : vector<8x96xf32> to vector<8x8xf32>
    %46 = arith.truncf %45 : vector<8x8xf32> to vector<8x8xbf16>
    "tpu.trace_start"() <{level = 10 : i32, message = "qd,kd->qk"}> : () -> ()
    %cst_20 = arith.constant dense<0.000000e+00> : vector<8x8xf32>
    %47 = tpu.matmul %42, %44, %cst_20 {dimension_numbers = #tpu.dot_dimension_numbers<[1], [1], [0], [0], [0, 0, 1, 0], [], []>} : vector<8x8xbf16>, vector<8x8xbf16>, vector<8x8xf32> -> vector<8x8xf32>
    "tpu.trace_stop"() : () -> ()
    %cst_21 = arith.constant 0.353553385 : f32
    %48 = vector.broadcast %cst_21 : f32 to vector<8x8xf32>
    %49 = arith.mulf %47, %48 : vector<8x8xf32>
    %50 = vector.broadcast %40 : vector<1x8xf32> to vector<8x8xf32>
    %51 = arith.addf %49, %50 : vector<8x8xf32>
    %cst_22 = arith.constant dense<0xFF800000> : vector<8xf32>
    %52 = vector.multi_reduction <maximumf>, %51, %cst_22 [1] : vector<8x8xf32> to vector<8xf32>
    %53 = vector.shape_cast %52 : vector<8xf32> to vector<8x1xf32>
    %54 = vector.broadcast %53 : vector<8x1xf32> to vector<8x8xf32>
    %55 = arith.subf %51, %54 : vector<8x8xf32>
    %56 = math.exp %55 : vector<8x8xf32>
    %cst_23 = arith.constant dense<0.000000e+00> : vector<8xf32>
    %57 = vector.multi_reduction <add>, %56, %cst_23 [1] : vector<8x8xf32> to vector<8xf32>
    %58 = vector.shape_cast %57 : vector<8xf32> to vector<8x1xf32>
    %59 = tpu.reciprocal %58 {approx = true} : vector<8x1xf32> -> vector<8x1xf32>
    %60 = vector.broadcast %59 : vector<8x1xf32> to vector<8x8xf32>
    %61 = arith.mulf %56, %60 : vector<8x8xf32>
    %62 = arith.truncf %61 : vector<8x8xf32> to vector<8x8xbf16>
    %cst_24 = arith.constant dense<0.000000e+00> : vector<8x8xf32>
    %63 = tpu.matmul %62, %46, %cst_24 {dimension_numbers = #tpu.dot_dimension_numbers<[1], [0], [0], [1], [0, 0, 1, 1], [], []>} : vector<8x8xbf16>, vector<8x8xbf16>, vector<8x8xf32> -> vector<8x8xf32>
    %64 = vector.extract_strided_slice %34 {offsets = [0, 8], sizes = [8, 8], strides = [1, 1]} : vector<8x96xf32> to vector<8x8xf32>
    %65 = arith.truncf %64 : vector<8x8xf32> to vector<8x8xbf16>
    %66 = vector.extract_strided_slice %34 {offsets = [0, 40], sizes = [8, 8], strides = [1, 1]} : vector<8x96xf32> to vector<8x8xf32>
    %67 = arith.truncf %66 : vector<8x8xf32> to vector<8x8xbf16>
    %68 = vector.extract_strided_slice %34 {offsets = [0, 72], sizes = [8, 8], strides = [1, 1]} : vector<8x96xf32> to vector<8x8xf32>
    %69 = arith.truncf %68 : vector<8x8xf32> to vector<8x8xbf16>
    "tpu.trace_start"() <{level = 10 : i32, message = "qd,kd->qk"}> : () -> ()
    %cst_25 = arith.constant dense<0.000000e+00> : vector<8x8xf32>
    %70 = tpu.matmul %65, %67, %cst_25 {dimension_numbers = #tpu.dot_dimension_numbers<[1], [1], [0], [0], [0, 0, 1, 0], [], []>} : vector<8x8xbf16>, vector<8x8xbf16>, vector<8x8xf32> -> vector<8x8xf32>
    "tpu.trace_stop"() : () -> ()
    %cst_26 = arith.constant 0.353553385 : f32
    %71 = vector.broadcast %cst_26 : f32 to vector<8x8xf32>
    %72 = arith.mulf %70, %71 : vector<8x8xf32>
    %73 = vector.broadcast %40 : vector<1x8xf32> to vector<8x8xf32>
    %74 = arith.addf %72, %73 : vector<8x8xf32>
    %cst_27 = arith.constant dense<0xFF800000> : vector<8xf32>
    %75 = vector.multi_reduction <maximumf>, %74, %cst_27 [1] : vector<8x8xf32> to vector<8xf32>
    %76 = vector.shape_cast %75 : vector<8xf32> to vector<8x1xf32>
    %77 = vector.broadcast %76 : vector<8x1xf32> to vector<8x8xf32>
    %78 = arith.subf %74, %77 : vector<8x8xf32>
    %79 = math.exp %78 : vector<8x8xf32>
    %cst_28 = arith.constant dense<0.000000e+00> : vector<8xf32>
    %80 = vector.multi_reduction <add>, %79, %cst_28 [1] : vector<8x8xf32> to vector<8xf32>
    %81 = vector.shape_cast %80 : vector<8xf32> to vector<8x1xf32>
    %82 = tpu.reciprocal %81 {approx = true} : vector<8x1xf32> -> vector<8x1xf32>
    %83 = vector.broadcast %82 : vector<8x1xf32> to vector<8x8xf32>
    %84 = arith.mulf %79, %83 : vector<8x8xf32>
    %85 = arith.truncf %84 : vector<8x8xf32> to vector<8x8xbf16>
    %cst_29 = arith.constant dense<0.000000e+00> : vector<8x8xf32>
    %86 = tpu.matmul %85, %69, %cst_29 {dimension_numbers = #tpu.dot_dimension_numbers<[1], [0], [0], [1], [0, 0, 1, 1], [], []>} : vector<8x8xbf16>, vector<8x8xbf16>, vector<8x8xf32> -> vector<8x8xf32>
    %87 = vector.extract_strided_slice %34 {offsets = [0, 16], sizes = [8, 8], strides = [1, 1]} : vector<8x96xf32> to vector<8x8xf32>
    %88 = arith.truncf %87 : vector<8x8xf32> to vector<8x8xbf16>
    %89 = vector.extract_strided_slice %34 {offsets = [0, 48], sizes = [8, 8], strides = [1, 1]} : vector<8x96xf32> to vector<8x8xf32>
    %90 = arith.truncf %89 : vector<8x8xf32> to vector<8x8xbf16>
    %91 = vector.extract_strided_slice %34 {offsets = [0, 80], sizes = [8, 8], strides = [1, 1]} : vector<8x96xf32> to vector<8x8xf32>
    %92 = arith.truncf %91 : vector<8x8xf32> to vector<8x8xbf16>
    "tpu.trace_start"() <{level = 10 : i32, message = "qd,kd->qk"}> : () -> ()
    %cst_30 = arith.constant dense<0.000000e+00> : vector<8x8xf32>
    %93 = tpu.matmul %88, %90, %cst_30 {dimension_numbers = #tpu.dot_dimension_numbers<[1], [1], [0], [0], [0, 0, 1, 0], [], []>} : vector<8x8xbf16>, vector<8x8xbf16>, vector<8x8xf32> -> vector<8x8xf32>
    "tpu.trace_stop"() : () -> ()
    %cst_31 = arith.constant 0.353553385 : f32
    %94 = vector.broadcast %cst_31 : f32 to vector<8x8xf32>
    %95 = arith.mulf %93, %94 : vector<8x8xf32>
    %96 = vector.broadcast %40 : vector<1x8xf32> to vector<8x8xf32>
    %97 = arith.addf %95, %96 : vector<8x8xf32>
    %cst_32 = arith.constant dense<0xFF800000> : vector<8xf32>
    %98 = vector.multi_reduction <maximumf>, %97, %cst_32 [1] : vector<8x8xf32> to vector<8xf32>
    %99 = vector.shape_cast %98 : vector<8xf32> to vector<8x1xf32>
    %100 = vector.broadcast %99 : vector<8x1xf32> to vector<8x8xf32>
    %101 = arith.subf %97, %100 : vector<8x8xf32>
    %102 = math.exp %101 : vector<8x8xf32>
    %cst_33 = arith.constant dense<0.000000e+00> : vector<8xf32>
    %103 = vector.multi_reduction <add>, %102, %cst_33 [1] : vector<8x8xf32> to vector<8xf32>
    %104 = vector.shape_cast %103 : vector<8xf32> to vector<8x1xf32>
    %105 = tpu.reciprocal %104 {approx = true} : vector<8x1xf32> -> vector<8x1xf32>
    %106 = vector.broadcast %105 : vector<8x1xf32> to vector<8x8xf32>
    %107 = arith.mulf %102, %106 : vector<8x8xf32>
    %108 = arith.truncf %107 : vector<8x8xf32> to vector<8x8xbf16>
    %cst_34 = arith.constant dense<0.000000e+00> : vector<8x8xf32>
    %109 = tpu.matmul %108, %92, %cst_34 {dimension_numbers = #tpu.dot_dimension_numbers<[1], [0], [0], [1], [0, 0, 1, 1], [], []>} : vector<8x8xbf16>, vector<8x8xbf16>, vector<8x8xf32> -> vector<8x8xf32>
    %110 = vector.extract_strided_slice %34 {offsets = [0, 24], sizes = [8, 8], strides = [1, 1]} : vector<8x96xf32> to vector<8x8xf32>
    %111 = arith.truncf %110 : vector<8x8xf32> to vector<8x8xbf16>
    %112 = vector.extract_strided_slice %34 {offsets = [0, 56], sizes = [8, 8], strides = [1, 1]} : vector<8x96xf32> to vector<8x8xf32>
    %113 = arith.truncf %112 : vector<8x8xf32> to vector<8x8xbf16>
    %114 = vector.extract_strided_slice %34 {offsets = [0, 88], sizes = [8, 8], strides = [1, 1]} : vector<8x96xf32> to vector<8x8xf32>
    %115 = arith.truncf %114 : vector<8x8xf32> to vector<8x8xbf16>
    "tpu.trace_start"() <{level = 10 : i32, message = "qd,kd->qk"}> : () -> ()
    %cst_35 = arith.constant dense<0.000000e+00> : vector<8x8xf32>
    %116 = tpu.matmul %111, %113, %cst_35 {dimension_numbers = #tpu.dot_dimension_numbers<[1], [1], [0], [0], [0, 0, 1, 0], [], []>} : vector<8x8xbf16>, vector<8x8xbf16>, vector<8x8xf32> -> vector<8x8xf32>
    "tpu.trace_stop"() : () -> ()
    %cst_36 = arith.constant 0.353553385 : f32
    %117 = vector.broadcast %cst_36 : f32 to vector<8x8xf32>
    %118 = arith.mulf %116, %117 : vector<8x8xf32>
    %119 = vector.broadcast %40 : vector<1x8xf32> to vector<8x8xf32>
    %120 = arith.addf %118, %119 : vector<8x8xf32>
    %cst_37 = arith.constant dense<0xFF800000> : vector<8xf32>
    %121 = vector.multi_reduction <maximumf>, %120, %cst_37 [1] : vector<8x8xf32> to vector<8xf32>
    %122 = vector.shape_cast %121 : vector<8xf32> to vector<8x1xf32>
    %123 = vector.broadcast %122 : vector<8x1xf32> to vector<8x8xf32>
    %124 = arith.subf %120, %123 : vector<8x8xf32>
    %125 = math.exp %124 : vector<8x8xf32>
    %cst_38 = arith.constant dense<0.000000e+00> : vector<8xf32>
    %126 = vector.multi_reduction <add>, %125, %cst_38 [1] : vector<8x8xf32> to vector<8xf32>
    %127 = vector.shape_cast %126 : vector<8xf32> to vector<8x1xf32>
    %128 = tpu.reciprocal %127 {approx = true} : vector<8x1xf32> -> vector<8x1xf32>
    %129 = vector.broadcast %128 : vector<8x1xf32> to vector<8x8xf32>
    %130 = arith.mulf %125, %129 : vector<8x8xf32>
    %131 = arith.truncf %130 : vector<8x8xf32> to vector<8x8xbf16>
    %cst_39 = arith.constant dense<0.000000e+00> : vector<8x8xf32>
    %132 = tpu.matmul %131, %115, %cst_39 {dimension_numbers = #tpu.dot_dimension_numbers<[1], [0], [0], [1], [0, 0, 1, 1], [], []>} : vector<8x8xbf16>, vector<8x8xbf16>, vector<8x8xf32> -> vector<8x8xf32>
    %133 = tpu.concatenate %63, %86, %109, %132 in 1 : vector<8x8xf32>, vector<8x8xf32>, vector<8x8xf32>, vector<8x8xf32> -> vector<8x32xf32>
    %134 = arith.truncf %133 : vector<8x32xf32> to vector<8x32xbf16>
    %c0_40 = arith.constant 0 : index
    %c0_41 = arith.constant 0 : index
    %135 = vector.load %arg7[%c0_40, %c0_41] : memref<32x32xbf16, #tpu.memory_space<vmem>>, vector<32x32xbf16>
    %cst_42 = arith.constant dense<0.000000e+00> : vector<8x32xf32>
    %136 = tpu.matmul %134, %135, %cst_42 {dimension_numbers = #tpu.dot_dimension_numbers<[1], [0], [0], [1], [0, 0, 1, 1], [], []>} : vector<8x32xbf16>, vector<32x32xbf16>, vector<8x32xf32> -> vector<8x32xf32>
    %c0_43 = arith.constant 0 : index
    %c0_44 = arith.constant 0 : index
    %137 = vector.load %arg8[%c0_43, %c0_44] : memref<1x32xf32, #tpu.memory_space<vmem>>, vector<1x32xf32>
    %138 = vector.broadcast %137 : vector<1x32xf32> to vector<8x32xf32>
    %139 = arith.addf %136, %138 : vector<8x32xf32>
    %140 = arith.addf %139, %28 : vector<8x32xf32>
    %c0_45 = arith.constant 0 : index
    %c0_46 = arith.constant 0 : index
    %141 = vector.load %arg9[%c0_45, %c0_46] : memref<1x32xf32, #tpu.memory_space<vmem>>, vector<1x32xf32>
    %c0_47 = arith.constant 0 : index
    %c0_48 = arith.constant 0 : index
    %142 = vector.load %arg10[%c0_47, %c0_48] : memref<1x32xf32, #tpu.memory_space<vmem>>, vector<1x32xf32>
    %cst_49 = arith.constant dense<0.000000e+00> : vector<8xf32>
    %143 = vector.multi_reduction <add>, %140, %cst_49 [1] : vector<8x32xf32> to vector<8xf32>
    %144 = vector.shape_cast %143 : vector<8xf32> to vector<8x1xf32>
    %cst_50 = arith.constant 3.200000e+01 : f32
    %145 = vector.broadcast %cst_50 : f32 to vector<8x1xf32>
    %146 = arith.divf %144, %145 : vector<8x1xf32>
    %147 = vector.broadcast %146 : vector<8x1xf32> to vector<8x32xf32>
    %148 = arith.subf %140, %147 : vector<8x32xf32>
    %149 = vector.broadcast %146 : vector<8x1xf32> to vector<8x32xf32>
    %150 = arith.subf %140, %149 : vector<8x32xf32>
    %151 = arith.mulf %148, %150 : vector<8x32xf32>
    %cst_51 = arith.constant dense<0.000000e+00> : vector<8xf32>
    %152 = vector.multi_reduction <add>, %151, %cst_51 [1] : vector<8x32xf32> to vector<8xf32>
    %153 = vector.shape_cast %152 : vector<8xf32> to vector<8x1xf32>
    %cst_52 = arith.constant 3.200000e+01 : f32
    %154 = vector.broadcast %cst_52 : f32 to vector<8x1xf32>
    %155 = arith.divf %153, %154 : vector<8x1xf32>
    %156 = vector.broadcast %146 : vector<8x1xf32> to vector<8x32xf32>
    %157 = arith.subf %140, %156 : vector<8x32xf32>
    %cst_53 = arith.constant 9.99999996E-13 : f32
    %158 = vector.broadcast %cst_53 : f32 to vector<8x1xf32>
    %159 = arith.addf %155, %158 : vector<8x1xf32>
    %160 = math.rsqrt %159 : vector<8x1xf32>
    %161 = vector.broadcast %160 : vector<8x1xf32> to vector<8x32xf32>
    %162 = arith.mulf %157, %161 : vector<8x32xf32>
    %163 = vector.broadcast %141 : vector<1x32xf32> to vector<8x32xf32>
    %164 = arith.mulf %162, %163 : vector<8x32xf32>
    %165 = vector.broadcast %142 : vector<1x32xf32> to vector<8x32xf32>
    %166 = arith.addf %164, %165 : vector<8x32xf32>
    %167 = arith.truncf %166 : vector<8x32xf32> to vector<8x32xbf16>
    %c0_54 = arith.constant 0 : index
    %c0_55 = arith.constant 0 : index
    %168 = vector.load %arg11[%c0_54, %c0_55] : memref<32x64xbf16, #tpu.memory_space<vmem>>, vector<32x64xbf16>
    %cst_56 = arith.constant dense<0.000000e+00> : vector<8x64xf32>
    %169 = tpu.matmul %167, %168, %cst_56 {dimension_numbers = #tpu.dot_dimension_numbers<[1], [0], [0], [1], [0, 0, 1, 1], [], []>} : vector<8x32xbf16>, vector<32x64xbf16>, vector<8x64xf32> -> vector<8x64xf32>
    %c0_57 = arith.constant 0 : index
    %c0_58 = arith.constant 0 : index
    %170 = vector.load %arg12[%c0_57, %c0_58] : memref<1x64xf32, #tpu.memory_space<vmem>>, vector<1x64xf32>
    %171 = vector.broadcast %170 : vector<1x64xf32> to vector<8x64xf32>
    %172 = arith.addf %169, %171 : vector<8x64xf32>
    %cst_59 = arith.constant 5.000000e-01 : f32
    %173 = vector.broadcast %cst_59 : f32 to vector<8x64xf32>
    %174 = arith.mulf %173, %172 : vector<8x64xf32>
    %cst_60 = arith.constant 4.471500e-02 : f32
    %175 = vector.broadcast %cst_60 : f32 to vector<8x64xf32>
    %176 = arith.mulf %175, %172 : vector<8x64xf32>
    %177 = arith.mulf %176, %172 : vector<8x64xf32>
    %178 = arith.mulf %177, %172 : vector<8x64xf32>
    %179 = arith.addf %172, %178 : vector<8x64xf32>
    %cst_61 = arith.constant 0.797884583 : f32
    %180 = vector.broadcast %cst_61 : f32 to vector<8x64xf32>
    %181 = arith.mulf %180, %179 : vector<8x64xf32>
    %182 = math.tanh %181 : vector<8x64xf32>
    %cst_62 = arith.constant 1.000000e+00 : f32
    %183 = vector.broadcast %cst_62 : f32 to vector<8x64xf32>
    %184 = arith.addf %183, %182 : vector<8x64xf32>
    %185 = arith.mulf %174, %184 : vector<8x64xf32>
    %186 = arith.truncf %185 : vector<8x64xf32> to vector<8x64xbf16>
    %c0_63 = arith.constant 0 : index
    %c0_64 = arith.constant 0 : index
    %187 = vector.load %arg13[%c0_63, %c0_64] : memref<64x32xbf16, #tpu.memory_space<vmem>>, vector<64x32xbf16>
    %cst_65 = arith.constant dense<0.000000e+00> : vector<8x32xf32>
    %188 = tpu.matmul %186, %187, %cst_65 {dimension_numbers = #tpu.dot_dimension_numbers<[1], [0], [0], [1], [0, 0, 1, 1], [], []>} : vector<8x64xbf16>, vector<64x32xbf16>, vector<8x32xf32> -> vector<8x32xf32>
    %c0_66 = arith.constant 0 : index
    %c0_67 = arith.constant 0 : index
    %189 = vector.load %arg14[%c0_66, %c0_67] : memref<1x32xf32, #tpu.memory_space<vmem>>, vector<1x32xf32>
    %190 = vector.broadcast %189 : vector<1x32xf32> to vector<8x32xf32>
    %191 = arith.addf %188, %190 : vector<8x32xf32>
    %192 = arith.addf %191, %166 : vector<8x32xf32>
    %c0_68 = arith.constant 0 : index
    %c0_69 = arith.constant 0 : index
    %193 = vector.load %arg15[%c0_68, %c0_69] : memref<1x32xf32, #tpu.memory_space<vmem>>, vector<1x32xf32>
    %c0_70 = arith.constant 0 : index
    %c0_71 = arith.constant 0 : index
    %194 = vector.load %arg16[%c0_70, %c0_71] : memref<1x32xf32, #tpu.memory_space<vmem>>, vector<1x32xf32>
    %cst_72 = arith.constant dense<0.000000e+00> : vector<8xf32>
    %195 = vector.multi_reduction <add>, %192, %cst_72 [1] : vector<8x32xf32> to vector<8xf32>
    %196 = vector.shape_cast %195 : vector<8xf32> to vector<8x1xf32>
    %cst_73 = arith.constant 3.200000e+01 : f32
    %197 = vector.broadcast %cst_73 : f32 to vector<8x1xf32>
    %198 = arith.divf %196, %197 : vector<8x1xf32>
    %199 = vector.broadcast %198 : vector<8x1xf32> to vector<8x32xf32>
    %200 = arith.subf %192, %199 : vector<8x32xf32>
    %201 = vector.broadcast %198 : vector<8x1xf32> to vector<8x32xf32>
    %202 = arith.subf %192, %201 : vector<8x32xf32>
    %203 = arith.mulf %200, %202 : vector<8x32xf32>
    %cst_74 = arith.constant dense<0.000000e+00> : vector<8xf32>
    %204 = vector.multi_reduction <add>, %203, %cst_74 [1] : vector<8x32xf32> to vector<8xf32>
    %205 = vector.shape_cast %204 : vector<8xf32> to vector<8x1xf32>
    %cst_75 = arith.constant 3.200000e+01 : f32
    %206 = vector.broadcast %cst_75 : f32 to vector<8x1xf32>
    %207 = arith.divf %205, %206 : vector<8x1xf32>
    %208 = vector.broadcast %198 : vector<8x1xf32> to vector<8x32xf32>
    %209 = arith.subf %192, %208 : vector<8x32xf32>
    %cst_76 = arith.constant 9.99999996E-13 : f32
    %210 = vector.broadcast %cst_76 : f32 to vector<8x1xf32>
    %211 = arith.addf %207, %210 : vector<8x1xf32>
    %212 = math.rsqrt %211 : vector<8x1xf32>
    %213 = vector.broadcast %212 : vector<8x1xf32> to vector<8x32xf32>
    %214 = arith.mulf %209, %213 : vector<8x32xf32>
    %215 = vector.broadcast %193 : vector<1x32xf32> to vector<8x32xf32>
    %216 = arith.mulf %214, %215 : vector<8x32xf32>
    %217 = vector.broadcast %194 : vector<1x32xf32> to vector<8x32xf32>
    %218 = arith.addf %216, %217 : vector<8x32xf32>
    %219 = vector.shape_cast %218 : vector<8x32xf32> to vector<1x8x32xf32>
    %220 = arith.truncf %219 : vector<1x8x32xf32> to vector<1x8x32xbf16>
    %c0_77 = arith.constant 0 : index
    %c0_78 = arith.constant 0 : index
    %c0_79 = arith.constant 0 : index
    %221 = vector.load %arg17[%c0_77, %c0_78, %c0_79] : memref<1x8x32xbf16, #tpu.memory_space<vmem>>, vector<1x8x32xbf16>
    tpu.vector_store %arg17[%c0_77, %c0_78, %c0_79], %220 {strides = array<i32>} : memref<1x8x32xbf16, #tpu.memory_space<vmem>>, vector<1x8x32xbf16>,
    return
  }
  func.func @transform_0(%arg0: i32) -> (i32, i32, i32) {
    %c0_i32 = arith.constant 0 : i32
    %c0_i32_0 = arith.constant 0 : i32
    %c0_i32_1 = arith.constant 0 : i32
    return %arg0, %c0_i32, %c0_i32_0 : i32, i32, i32
  }
  func.func @transform_1(%arg0: i32) -> (i32, i32, i32) {
    %c0_i32 = arith.constant 0 : i32
    %c0_i32_0 = arith.constant 0 : i32
    %c0_i32_1 = arith.constant 0 : i32
    return %arg0, %c0_i32, %c0_i32_0 : i32, i32, i32
  }
  func.func @transform_2(%arg0: i32) -> (i32, i32) {
    %c0_i32 = arith.constant 0 : i32
    %c0_i32_0 = arith.constant 0 : i32
    %c0_i32_1 = arith.constant 0 : i32
    return %c0_i32, %c0_i32_0 : i32, i32
  }
  func.func @transform_3(%arg0: i32) -> (i32, i32) {
    %c0_i32 = arith.constant 0 : i32
    %c0_i32_0 = arith.constant 0 : i32
    %c0_i32_1 = arith.constant 0 : i32
    return %c0_i32, %c0_i32_0 : i32, i32
  }
  func.func @transform_4(%arg0: i32) -> (i32, i32) {
    %c0_i32 = arith.constant 0 : i32
    %c0_i32_0 = arith.constant 0 : i32
    %c0_i32_1 = arith.constant 0 : i32
    return %c0_i32, %c0_i32_0 : i32, i32
  }
  func.func @transform_5(%arg0: i32) -> (i32, i32) {
    %c0_i32 = arith.constant 0 : i32
    %c0_i32_0 = arith.constant 0 : i32
    %c0_i32_1 = arith.constant 0 : i32
    return %c0_i32, %c0_i32_0 : i32, i32
  }
  func.func @transform_6(%arg0: i32) -> (i32, i32) {
    %c0_i32 = arith.constant 0 : i32
    %c0_i32_0 = arith.constant 0 : i32
    %c0_i32_1 = arith.constant 0 : i32
    return %c0_i32, %c0_i32_0 : i32, i32
  }
  func.func @transform_7(%arg0: i32) -> (i32, i32) {
    %c0_i32 = arith.constant 0 : i32
    %c0_i32_0 = arith.constant 0 : i32
    %c0_i32_1 = arith.constant 0 : i32
    return %c0_i32, %c0_i32_0 : i32, i32
  }
  func.func @transform_8(%arg0: i32) -> (i32, i32) {
    %c0_i32 = arith.constant 0 : i32
    %c0_i32_0 = arith.constant 0 : i32
    %c0_i32_1 = arith.constant 0 : i32
    return %c0_i32, %c0_i32_0 : i32, i32
  }
  func.func @transform_9(%arg0: i32) -> (i32, i32) {
    %c0_i32 = arith.constant 0 : i32
    %c0_i32_0 = arith.constant 0 : i32
    %c0_i32_1 = arith.constant 0 : i32
    return %c0_i32, %c0_i32_0 : i32, i32
  }
  func.func @transform_10(%arg0: i32) -> (i32, i32) {
    %c0_i32 = arith.constant 0 : i32
    %c0_i32_0 = arith.constant 0 : i32
    %c0_i32_1 = arith.constant 0 : i32
    return %c0_i32, %c0_i32_0 : i32, i32
  }
  func.func @transform_11(%arg0: i32) -> (i32, i32) {
    %c0_i32 = arith.constant 0 : i32
    %c0_i32_0 = arith.constant 0 : i32
    %c0_i32_1 = arith.constant 0 : i32
    return %c0_i32, %c0_i32_0 : i32, i32
  }
  func.func @transform_12(%arg0: i32) -> (i32, i32) {
    %c0_i32 = arith.constant 0 : i32
    %c0_i32_0 = arith.constant 0 : i32
    %c0_i32_1 = arith.constant 0 : i32
    return %c0_i32, %c0_i32_0 : i32, i32
  }
  func.func @transform_13(%arg0: i32) -> (i32, i32) {
    %c0_i32 = arith.constant 0 : i32
    %c0_i32_0 = arith.constant 0 : i32
    %c0_i32_1 = arith.constant 0 : i32
    return %c0_i32, %c0_i32_0 : i32, i32
  }
  func.func @transform_14(%arg0: i32) -> (i32, i32) {
    %c0_i32 = arith.constant 0 : i32
    %c0_i32_0 = arith.constant 0 : i32
    %c0_i32_1 = arith.constant 0 : i32
    return %c0_i32, %c0_i32_0 : i32, i32
  }
  func.func @transform_15(%arg0: i32) -> (i32, i32) {
    %c0_i32 = arith.constant 0 : i32
    %c0_i32_0 = arith.constant 0 : i32
    %c0_i32_1 = arith.constant 0 : i32
    return %c0_i32, %c0_i32_0 : i32, i32
  }
  func.func @transform_16(%arg0: i32) -> (i32, i32, i32) {
    %c0_i32 = arith.constant 0 : i32
    %c0_i32_0 = arith.constant 0 : i32
    %c0_i32_1 = arith.constant 0 : i32
    return %arg0, %c0_i32, %c0_i32_0 : i32, i32, i32
  }
}

</mosaic_0001>

<bundles_post_ra>
// kernel: news_classifier_forward.2
= control target key start
LH: loop header
LB: loop body
LE: loop exit
PB: predicated region body
PF: predicated region fallthrough
CT: control target
= control target key end

     0   :  { %s1374_s21 = smov 0   ;;  %s1523_s0 = inlined_call_operand.vmem [shape: bf16[2,8,32], index: 0, kind: input, shape index: {}]   ;;  %s1524_s1 = inlined_call_operand.vmem [shape: f32[2,1,8], index: 1, kind: input, shape index: {}]   ;;  %s1525_s2 = inlined_call_operand.vmem [shape: f32[1,32], index: 2, kind: input, shape index: {}]   ;;  %s1526_s3 = inlined_call_operand.vmem [shape: f32[1,32], index: 3, kind: input, shape index: {}]   ;;  %s1527_s4 = inlined_call_operand.vmem [shape: bf16[32,96], index: 4, kind: input, shape index: {}]   ;;  %s1528_s5 = inlined_call_operand.vmem [shape: f32[1,96], index: 5, kind: input, shape index: {}]   ;;  %s1529_s6 = inlined_call_operand.vmem [shape: bf16[32,32], index: 6, kind: input, shape index: {}]   ;;  %s1530_s7 = inlined_call_operand.vmem [shape: f32[1,32], index: 7, kind: input, shape index: {}]   ;;  %s1531_s8 = inlined_call_operand.vmem [shape: f32[1,32], index: 8, kind: input, shape index: {}]   ;;  %s1532_s9 = inlined_call_operand.vmem [shape: f32[1,32], index: 9, kind: input, shape index: {}]   ;;  %s1533_s10 = inlined_call_operand.vmem [shape: bf16[32,64], index: 10, kind: input, shape index: {}]   ;;  %s1534_s11 = inlined_call_operand.vmem [shape: f32[1,64], index: 11, kind: input, shape index: {}]   ;;  %s1535_s12 = inlined_call_operand.vmem [shape: bf16[64,32], index: 12, kind: input, shape index: {}]   ;;  %s1536_s13 = inlined_call_operand.vmem [shape: f32[1,32], index: 13, kind: input, shape index: {}]   ;;  %s1537_s14 = inlined_call_operand.vmem [shape: f32[1,32], index: 14, kind: input, shape index: {}]   ;;  %s1538_s15 = inlined_call_operand.vmem [shape: f32[1,32], index: 15, kind: input, shape index: {}]   ;;  %s1539_s16 = inlined_call_operand.vmem [shape: bf16[2,8,32], index: 16, kind: output, shape index: {}]  }
   0x1   :  { %1540 = sst [smem:[#allocation2_spill]] %s1523_s0 }
   0x2 LB: > { %s1136_s22 = sadd.s32 4294967295, %s1272_s21   ;;  %p1140_p0 = scmp.ge.s32.totalorder %s1272_s21, 1  ;;  %s1272_s21 = sphi %s1374_s21, %s26_s21  }
   0x3   : > { %p469_p1 = scmp.lt.s32.totalorder %s1272_s21, 3 }
   0x5   : > { %p470_p2 = pnand %p1140_p0, %p469_p1 }
   0x6   : > { %p520_p3 = scmp.lt.s32.totalorder (!%p470_p2), %s1136_s22, 1  ;;  %s1541_s26 = sld [smem:[#allocation2_spill]] (!%p470_p2) }
   0x7   : > { %473 = sbr.rel (%p470_p2) target bundleno = 2168 (0x878), region = 84  ;;  %s1277_s28 = smov (!%p470_p2), 96  }
   0x8   : > { %s1278_s29 = smov (!%p470_p2), 72   ;;  %s1279_s30 = smov (!%p470_p2), 88  }
   0x9   : > { %s1280_s0 = smov (!%p470_p2), 112   ;;  %s1281_s17 = smov (!%p470_p2), 80  }
   0xa   : > { %s1282_s24 = smov (!%p470_p2), 64   ;;  %s1283_s25 = smov (!%p470_p2), 56  }
   0xc   : > { %s1543_s22 = smov (!%p520_p3, %s1136_s22), 1  ;;  %vm536_vm0 = vcmask 261120   ;;  %v1274_v3 = vmov 32.0   ;;  %v1198_v15 = vld [vmem:[%s1527_s4 + $0x8] sm:$0xff]  ;;  %v1197_v16 = vld [vmem:[%s1527_s4] sm:$0xff]  ;;  %vm618_vm5 = vcmask 64512  }
   0xd   : > { %s1141_s23 = sshll.u32 %s1543_s22, 2  ;;  %1240 = vrcp.f32 %v1274_v3  ;;  %604 = vmatpush.bf16.msra.mxu0 %v1198_v15  ;;  %v1230_v26 = vld [vmem:[%s1525_s2] ss:$0 sm:$0xff]  ;;  %s526_s20 = scalar_lea.vmem %s1524_s1, %s1543_s22  ;;  %vm660_vm6 = vcmask 1043456   ;;  %vm864_vm7 = vcmask 130048   ;;  %vm866_vm8 = vcmask 195584  }
   0xe   : > { %s523_s27 = scalar_lea.vmem %s1541_s26, %s1141_s23  ;;  %v1231_v29 = vld [vmem:[%s1526_s3] ss:$0 sm:$0xff]  ;;  %s1275_s26 = smov 104   ;;  %vm1021_vm12 = vcmask 523264  }
   0xf   : > { %v532_v0 = vld [vmem:[%s523_s27] sm:$0xf]  ;;  %s1276_s27 = smov 120  }
  0x10   : > { %v533_v1 = vunpack.c.l.bf16 %v532_v0  ;;  %v1232_v33 = vld [vmem:[%s1528_s5] ss:$0 sm:$0xff] }
  0x11   : > { %605 = vmatpush.bf16.msra.mxu0 %v1197_v16  ;;  %v611_v49 = vld [vmem:[%s526_s20] sm:$0x1] }
  0x12   : > { %v537_v2 = vsel %vm536_vm0, %v533_v1, 0.0  ;;  %v612_v50 = vsub.f32 1.0, %v611_v49 }
  0x13   : > { %538 = vadd.xlane.f32.xlu0 %v537_v2  ;;  %v1241_v4 = vpop.eup %1240 }
  0x14   : > { %v541_v5 = vmul.f32 32.0, %v1241_v4  ;;  %vm545_vm1 = vweird.f32 %v1241_v4  ;;  %v613_v51 = vmul.f32 -10000.0, %v612_v50 }
  0x16   : > { %v542_v6 = vsub.f32 1.0, %v541_v5  ;;  %v640_v52 = vperm.slane %v613_v51, 0 }
  0x18   : > { %v543_v7 = vmul.f32 %v1241_v4, %v542_v6 }
  0x1a   : > { %v544_v8 = vadd.f32 %v1241_v4, %v543_v7 }
  0x1c   : > { %v1391_v9 = vsel %vm545_vm1, %v1241_v4, %v544_v8 }
  0x86   : > { %v539_v10 = vpop.xlane.xlu0 %538 }
  0x87   : > { %v547_v11 = vmul.f32 %v1391_v9, %v539_v10 }
  0x89   : > { %v548_v12 = vsub.f32 %v533_v1, %v547_v11 }
  0x8b   : > { %v549_v13 = vmul.f32 %v548_v12, %v548_v12 }
  0x8d   : > { %v550_v14 = vsel %vm536_vm0, %v549_v13, 0.0 }
  0x8e   : > { %551 = vadd.xlane.f32.xlu0 %v550_v14 }
 0x101   : > { %v552_v17 = vpop.xlane.xlu0 %551 }
 0x102   : > { %v553_v18 = vmul.f32 %v552_v17, %v1391_v9 }
 0x104   : > { %v554_v19 = vadd.f32 1e-12, %v553_v18 }
 0x106   : > { %1242 = vrsqrt.f32 %v554_v19  ;;  %vm561_vm3 = vweird.f32 %v554_v19 }
 0x10c   : > { %v1243_v20 = vpop.eup %1242 }
 0x10d   : > { %v556_v21 = vmul.f32 %v1243_v20, %v554_v19  ;;  %vm562_vm2 = vweird.f32 %v1243_v20 }
 0x10e   : > { %vm563_vm4 = vmor %vm561_vm3, %vm562_vm2 }
 0x10f   : > { %v557_v22 = vmul.f32 %v1243_v20, %v556_v21 }
 0x111   : > { %v558_v23 = vmul.f32 0.5, %v557_v22 }
 0x113   : > { %v559_v24 = vsub.f32 1.5, %v558_v23 }
 0x115   : > { %v560_v25 = vmul.f32 %v1243_v20, %v559_v24 }
 0x117   : > { %v564_v27 = vsel %vm563_vm4, %v1243_v20, %v560_v25 }
 0x118   : > { %v565_v28 = vmul.f32 %v564_v27, %v548_v12 }
 0x11a   : > { %v569_v30 = vmul.f32 %v1230_v26, %v565_v28 }
 0x11c   : > { %v1408_v31 = vadd.f32 %v1231_v29, %v569_v30 }
 0x11e   : > { %v574_v32 = vpack.c.bf16 %v1408_v31, %v1408_v31 }
 0x120   : > { %1151 = vmatmul.msk.bf16.vlgmr.msra.gmra.mxu0 %vm536_vm0, %v574_v32 }
 0x19d   : > { %v607_v34 = vpop.f32.mrf.mxu0 }
 0x19e   : > { %v608_v35 = vadd.f32 %v1232_v33, %v607_v34 }
 0x1a0   : > { %v1416_v36 = vpack.c.bf16 %v608_v35, %v608_v35 }
 0x1a2   : > { %793 = vrot.lane.b32.xlu0 %v1416_v36, %s1275_s26  ;;  %677 = vrot.lane.b32.xlu2 %v1416_v36, %s1276_s27  ;;  %s1284_s26 = smov 40   ;;  %s1285_s27 = smov 48  }
 0x1a3   : > { %616 = vrot.lane.b32.xlu1 %v1416_v36, %s1277_s28  ;;  %s1286_s28 = smov 8  }
 0x1a5   : > { %v609_v37 = vpop.f32.mrf.mxu0 }
 0x1aa   : > { %795 = vrot.lane.b32.xlu2 %v1416_v36, %s1278_s29  ;;  %s1287_s29 = smov 24  }
 0x1ab   : > { %679 = vrot.lane.b32.xlu1 %v1416_v36, %s1279_s30  ;;  %s1288_s30 = smov 16  }
 0x1b2   : > { %735 = vrot.lane.b32.xlu2 %v1416_v36, %s1280_s0 }
 0x1b3   : > { %737 = vrot.lane.b32.xlu1 %v1416_v36, %s1281_s17 }
 0x1fc   : > { %v678_v38 = vpop.permute.xlu2 %677 }
 0x204   : > { %v796_v41 = vpop.permute.xlu2 %795 }
 0x205   : > { %v801_v44 = vsel %vm618_vm5, %v796_v41, 0 }
 0x20c   : > { %v736_v47 = vpop.permute.xlu2 %735 }
 0x214   : > { %v794_v48 = vpop.permute.xlu0 %793 }
 0x215   : > { %v617_v39 = vpop.permute.xlu1 %616 }
 0x216   : > { %v623_v40 = vsel %vm618_vm5, %v617_v39, 0 }
 0x217   : > { %632 = vmatpush.bf16.xpose.msra.mxu1 %v623_v40 }
 0x21d   : > { %v680_v42 = vpop.permute.xlu1 %679 }
 0x21e   : > { %1152 = vmatmul.msk.bf16.vlgmr.msra.gmra.mxu1 %vm618_vm5, %v1416_v36  ;;  %v685_v43 = vsel %vm618_vm5, %v680_v42, 0 }
 0x21f   : > { %694 = vmatpush.bf16.xpose.msra.mxu3 %v685_v43 }
 0x225   : > { %v738_v45 = vpop.permute.xlu1 %737 }
 0x226   : > { %1154 = vmatmul.msk.bf16.vlgmr.msra.gmra.mxu3 %vm618_vm5, %v678_v38  ;;  %v743_v46 = vsel %vm618_vm5, %v738_v45, 0 }
 0x227   : > { %810 = vmatpush.bf16.xpose.msrb.mxu3 %v801_v44  ;;  %752 = vmatpush.bf16.xpose.msrb.mxu0 %v743_v46 }
 0x22e   : > { %1156 = vmatmul.msk.bf16.vlgmr.msrb.gmra.mxu0 %vm618_vm5, %v736_v47 }
 0x236   : > { %1158 = vmatmul.msk.bf16.vlgmr.msrb.gmra.mxu3 %vm618_vm5, %v794_v48 }
 0x29b   : > { %v634_v53 = vpop.f32.mrf.mxu1 }
 0x29c   : > { %v638_v54 = vmul.f32 0.35355338, %v634_v53 }
 0x29e   : > { %v642_v55 = vadd.f32 %v640_v52, %v638_v54 }
 0x2a0   : > { %v643_v56 = vsel %vm618_vm5, %v642_v55, -inf }
 0x2a1   : > { %644 = vmax.xlane.f32.xlu1 %v643_v56 }
 0x2a3   : > { %v636_v57 = vpop.f32.mrf.mxu1 }
 0x2a9   : > { %v696_v58 = vpop.f32.mrf.mxu3 }
 0x2aa   : > { %v700_v59 = vmul.f32 0.35355338, %v696_v58 }
 0x2ab   : > { %v754_v60 = vpop.f32.mrf.mxu0 }
 0x2ac   : > { %v701_v61 = vadd.f32 %v700_v59, %v640_v52  ;;  %v758_v62 = vmul.f32 0.35355338, %v754_v60 }
 0x2ae   : > { %v702_v63 = vsel %vm618_vm5, %v701_v61, -inf  ;;  %v759_v1 = vadd.f32 %v758_v62, %v640_v52 }
 0x2af   : > { %703 = vmax.xlane.f32.xlu2 %v702_v63  ;;  %v1200_v63 = vld [vmem:[%s1529_s6 + $0x8] sm:$0xff] }
 0x2b0   : > { %v760_v3 = vsel %vm618_vm5, %v759_v1, -inf  ;;  %898 = vmatpush.bf16.msra.mxu0 %v1200_v63 }
 0x2b1   : > { %v698_v0 = vpop.f32.mrf.mxu3 }
 0x2b2   : > { %v1199_v0 = vld [vmem:[%s1529_s6] sm:$0xff] }
 0x2b3   : > { %v756_v2 = vpop.f32.mrf.mxu0 }
 0x2b4   : > { %899 = vmatpush.bf16.msra.mxu0 %v1199_v0 }
 0x2b7   : > { %761 = vmax.xlane.f32.xlu2 %v760_v3 }
 0x2b9   : > { %v812_v4 = vpop.f32.mrf.mxu3 }
 0x2ba   : > { %v816_v5 = vmul.f32 0.35355338, %v812_v4 }
 0x2bc   : > { %v817_v6 = vadd.f32 %v816_v5, %v640_v52 }
 0x2be   : > { %v818_v7 = vsel %vm618_vm5, %v817_v6, -inf }
 0x2bf   : > { %819 = vmax.xlane.f32.xlu0 %v818_v7 }
 0x2c1   : > { %v814_v8 = vpop.f32.mrf.mxu3 }
 0x2c2   : > { %v1233_v8 = vld [vmem:[%s1530_s7] ss:$0 sm:$0xff] }
 0x2cf   : > { %655 = vrot.lane.b32.xlu2 %v1416_v36, %s1282_s24 }
 0x2d3   : > { %714 = vrot.lane.b32.xlu0 %v1416_v36, %s1283_s25 }
 0x2d7   : > { %830 = vrot.lane.b32.xlu2 %v1416_v36, %s1284_s26 }
 0x2db   : > { %772 = vrot.lane.b32.xlu0 %v1416_v36, %s1285_s27  ;;  %s530_s27 = scalar_lea.vmem %s1539_s16, %s1141_s23 }
 0x314   : > { %v645_v10 = vpop.xlane.xlu1 %644 }
 0x315   : > { %v646_v11 = vsub.f32 %v642_v55, %v645_v10 }
 0x317   : > { %v647_v12 = vmul.f32 1.442695, %v646_v11 }
 0x319   : > { %1244 = vpow2.f32 %v647_v12 }
 0x31f   : > { %v1245_v13 = vpop.eup %1244 }
 0x320   : > { %v649_v14 = vsel %vm618_vm5, %v1245_v13, 0.0 }
 0x321   : > { %650 = vadd.xlane.f32.xlu1 %v649_v14 }
 0x322   : > { %v704_v15 = vpop.xlane.xlu2 %703 }
 0x323   : > { %v705_v16 = vsub.f32 %v701_v61, %v704_v15 }
 0x325   : > { %v706_v17 = vmul.f32 1.442695, %v705_v16 }
 0x327   : > { %1246 = vpow2.f32 %v706_v17 }
 0x32a   : > { %v762_v18 = vpop.xlane.xlu2 %761 }
 0x32b   : > { %v763_v25 = vsub.f32 %v759_v1, %v762_v18 }
 0x32d   : > { %v1247_v19 = vpop.eup %1246  ;;  %v764_v27 = vmul.f32 1.442695, %v763_v25 }
 0x32e   : > { %v708_v20 = vsel %vm618_vm5, %v1247_v19, 0.0 }
 0x32f   : > { %709 = vadd.xlane.f32.xlu1 %v708_v20  ;;  %v1202_v20 = vld [vmem:[%s1533_s10 + $0x8] sm:$0xff] }
 0x332   : > { %v820_v21 = vpop.xlane.xlu0 %819  ;;  %v656_v22 = vpop.permute.xlu2 %655 }
 0x333   : > { %v821_v23 = vsub.f32 %v817_v6, %v820_v21  ;;  %v662_v24 = vsel %vm660_vm6, %v656_v22, 0 }
 0x334   : > { %671 = vmatpush.bf16.msra.mxu2 %v662_v24 }
 0x335   : > { %v822_v26 = vmul.f32 1.442695, %v821_v23 }
 0x337   : > { %1248 = vpow2.f32 %v822_v26 }
 0x338   : > { %1250 = vpow2.f32 %v764_v27 }
 0x33a   : > { %v831_v40 = vpop.permute.xlu2 %830 }
 0x33b   : > { %v836_v42 = vsel %vm660_vm6, %v831_v40, 0  ;;  %v1204_v40 = vld [vmem:[%s1535_s12 + $0x8] sm:$0xff] }
 0x33d   : > { %v1249_v28 = vpop.eup %1248 }
 0x33e   : > { %v824_v29 = vsel %vm618_vm5, %v1249_v28, 0.0  ;;  %v1251_v30 = vpop.eup %1250 }
 0x33f   : > { %825 = vadd.xlane.f32.xlu1 %v824_v29  ;;  %v766_v34 = vsel %vm618_vm5, %v1251_v30, 0.0 }
 0x345   : > { %v715_v32 = vpop.permute.xlu0 %714 }
 0x346   : > { %v720_v33 = vsel %vm660_vm6, %v715_v32, 0 }
 0x347   : > { %729 = vmatpush.bf16.msrb.mxu2 %v720_v33  ;;  %767 = vadd.xlane.f32.xlu1 %v766_v34  ;;  %v1235_v33 = vld [vmem:[%s1532_s9] ss:$0 sm:$0xff] }
 0x34d   : > { %v773_v35 = vpop.permute.xlu0 %772 }
 0x34e   : > { %v778_v36 = vsel %vm660_vm6, %v773_v35, 0 }
 0x34f   : > { %787 = vmatpush.bf16.msrb.mxu1 %v778_v36 }
 0x353   : > { %968 = vmatpush.bf16.msra.mxu1 %v1202_v20 }
 0x394   : > { %v651_v37 = vpop.xlane.xlu1 %650 }
 0x395   : > { %1252 = vrcp.f32 %v651_v37 }
 0x39b   : > { %v1253_v38 = vpop.eup %1252 }
 0x39c   : > { %v653_v39 = vmul.f32 %v1253_v38, %v1245_v13  ;;  %v1206_v38 = vld [vmem:[%s1535_s12 + $0x18] sm:$0xff] }
 0x39d   : > { %1029 = vmatpush.bf16.msra.mxu3 %v1206_v38 }
 0x39e   : > { %v654_v41 = vpack.c.bf16 %v653_v39, %v653_v39  ;;  %v1205_v39 = vld [vmem:[%s1535_s12 + $0x10] sm:$0xff] }
 0x3a0   : > { %1153 = vmatmul.msk.bf16.vlgmr.msra.gmra.mxu2 %vm618_vm5, %v654_v41  ;;  %v1203_v41 = vld [vmem:[%s1535_s12] sm:$0xff] }
 0x3a1   : > { %845 = vmatpush.bf16.msra.mxu2 %v836_v42  ;;  %1030 = vmatpush.bf16.msra.mxu3 %v1205_v39  ;;  %v1236_v42 = vld [vmem:[%s1534_s11] ss:$0 sm:$0xff] }
 0x3a2   : > { %v710_v43 = vpop.xlane.xlu1 %709 }
 0x3a3   : > { %1254 = vrcp.f32 %v710_v43 }
 0x3a5   : > { %1031 = vmatpush.bf16.msra.mxu3 %v1204_v40 }
 0x3a9   : > { %v1255_v44 = vpop.eup %1254  ;;  %1032 = vmatpush.bf16.msra.mxu3 %v1203_v41 }
 0x3aa   : > { %v712_v45 = vmul.f32 %v1255_v44, %v1247_v19 }
 0x3ac   : > { %v713_v46 = vpack.c.bf16 %v712_v45, %v712_v45 }
 0x3b0   : > { %1155 = vmatmul.msk.bf16.vlgmr.msrb.gmra.mxu2 %vm618_vm5, %v713_v46 }
 0x3b2   : > { %v826_v47 = vpop.xlane.xlu1 %825 }
 0x3b3   : > { %1256 = vrcp.f32 %v826_v47 }
 0x3b9   : > { %v1257_v48 = vpop.eup %1256 }
 0x3ba   : > { %v828_v49 = vmul.f32 %v1257_v48, %v1249_v28  ;;  %v768_v50 = vpop.xlane.xlu1 %767 }
 0x3bb   : > { %1258 = vrcp.f32 %v768_v50 }
 0x3bc   : > { %v829_v51 = vpack.c.bf16 %v828_v49, %v828_v49 }
 0x3c0   : > { %1159 = vmatmul.msk.bf16.vlgmr.msra.gmra.mxu2 %vm618_vm5, %v829_v51 }
 0x3c1   : > { %v1259_v52 = vpop.eup %1258 }
 0x3c2   : > { %v770_v53 = vmul.f32 %v1259_v52, %v1251_v30  ;;  %v1234_v30 = vld [vmem:[%s1531_s8] ss:$0 sm:$0xff] }
 0x3c4   : > { %v771_v54 = vpack.c.bf16 %v770_v53, %v770_v53 }
 0x3c6   : > { %1157 = vmatmul.msk.bf16.vlgmr.msrb.gmra.mxu1 %vm618_vm5, %v771_v54 }
 0x423   : > { %v673_v55 = vpop.f32.mrf.mxu2 }
 0x42b   : > { %v675_v56 = vpop.f32.mrf.mxu2 }
 0x42c   : > { %v1237_v56 = vld [vmem:[%s1536_s13] ss:$0 sm:$0xff] }
 0x433   : > { %v731_v57 = vpop.f32.mrf.mxu2 }
 0x434   : > { %852 = vrot.lane.b32.xlu1 %v731_v57, %s1286_s28 }
 0x43b   : > { %v733_v58 = vpop.f32.mrf.mxu2 }
 0x443   : > { %v789_v59 = vpop.f32.mrf.mxu1  ;;  %v847_v60 = vpop.f32.mrf.mxu2 }
 0x444   : > { %860 = vrot.lane.b32.xlu0 %v847_v60, %s1287_s29  ;;  %856 = vrot.lane.b32.xlu2 %v789_v59, %s1288_s30 }
 0x44b   : > { %v791_v61 = vpop.f32.mrf.mxu1  ;;  %v849_v62 = vpop.f32.mrf.mxu2 }
 0x49e   : > { %v857_v3 = vpop.permute.xlu2 %856 }
 0x4a6   : > { %v853_v1 = vpop.permute.xlu1 %852 }
 0x4a7   : > { %v863_v2 = vsel %vm618_vm5, %v673_v55, %v853_v1 }
 0x4a8   : > { %v865_v5 = vsel %vm864_vm7, %v863_v2, %v857_v3 }
 0x4b6   : > { %v861_v4 = vpop.permute.xlu0 %860 }
 0x4b7   : > { %v867_v6 = vsel %vm866_vm8, %v865_v5, %v861_v4 }
 0x4b8   : > { %v868_v7 = vpack.c.bf16 %v867_v6, %v867_v6 }
 0x4ba   : > { %1168 = vmatmul.msk.bf16.vlgmr.msra.gmra.mxu0 %vm536_vm0, %v868_v7 }
 0x537   : > { %v901_v10 = vpop.f32.mrf.mxu0 }
 0x538   : > { %v902_v11 = vadd.f32 %v1233_v8, %v901_v10 }
 0x53a   : > { %v905_v12 = vadd.f32 %v902_v11, %v1408_v31  ;;  %v1201_v31 = vld [vmem:[%s1533_s10] sm:$0xff] }
 0x53b   : > { %969 = vmatpush.bf16.msra.mxu1 %v1201_v31 }
 0x53c   : > { %v908_v13 = vsel %vm536_vm0, %v905_v12, 0.0 }
 0x53d   : > { %909 = vadd.xlane.f32.xlu2 %v908_v13  ;;  %v1238_v13 = vld [vmem:[%s1537_s14] ss:$0 sm:$0xff] }
 0x53f   : > { %v903_v14 = vpop.f32.mrf.mxu0 }
 0x5b0   : > { %v910_v15 = vpop.xlane.xlu2 %909 }
 0x5b1   : > { %v911_v16 = vmul.f32 %v910_v15, %v1391_v9 }
 0x5b3   : > { %v912_v17 = vsub.f32 %v905_v12, %v911_v16 }
 0x5b5   : > { %v913_v18 = vmul.f32 %v912_v17, %v912_v17 }
 0x5b7   : > { %v914_v19 = vsel %vm536_vm0, %v913_v18, 0.0 }
 0x5b8   : > { %915 = vadd.xlane.f32.xlu0 %v914_v19 }
 0x62b   : > { %v916_v21 = vpop.xlane.xlu0 %915 }
 0x62c   : > { %v917_v22 = vmul.f32 %v916_v21, %v1391_v9 }
 0x62e   : > { %v918_v23 = vadd.f32 1e-12, %v917_v22 }
 0x630   : > { %1260 = vrsqrt.f32 %v918_v23  ;;  %vm925_vm10 = vweird.f32 %v918_v23 }
 0x636   : > { %v1261_v24 = vpop.eup %1260 }
 0x637   : > { %v920_v25 = vmul.f32 %v1261_v24, %v918_v23  ;;  %vm926_vm9 = vweird.f32 %v1261_v24 }
 0x638   : > { %vm927_vm11 = vmor %vm925_vm10, %vm926_vm9 }
 0x639   : > { %v921_v26 = vmul.f32 %v1261_v24, %v920_v25 }
 0x63b   : > { %v922_v27 = vmul.f32 0.5, %v921_v26 }
 0x63d   : > { %v923_v28 = vsub.f32 1.5, %v922_v27 }
 0x63f   : > { %v924_v29 = vmul.f32 %v1261_v24, %v923_v28 }
 0x641   : > { %v928_v32 = vsel %vm927_vm11, %v1261_v24, %v924_v29 }
 0x642   : > { %v929_v34 = vmul.f32 %v928_v32, %v912_v17 }
 0x644   : > { %v933_v35 = vmul.f32 %v1234_v30, %v929_v34 }
 0x646   : > { %v937_v36 = vadd.f32 %v1235_v33, %v933_v35 }
 0x648   : > { %v938_v37 = vpack.c.bf16 %v937_v36, %v937_v36 }
 0x64a   : > { %1177 = vmatmul.msk.bf16.vlgmr.msra.gmra.mxu1 %vm536_vm0, %v938_v37 }
 0x6c7   : > { %v971_v43 = vpop.f32.mrf.mxu1 }
 0x6c8   : > { %v972_v44 = vadd.f32 %v1236_v42, %v971_v43 }
 0x6ca   : > { %v976_v45 = vmul.f32 0.044715, %v972_v44  ;;  %v975_v52 = vmul.f32 0.5, %v972_v44 }
 0x6cc   : > { %v977_v46 = vmul.f32 %v976_v45, %v972_v44 }
 0x6ce   : > { %v978_v47 = vmul.f32 %v977_v46, %v972_v44 }
 0x6cf   : > { %v973_v48 = vpop.f32.mrf.mxu1 }
 0x6d0   : > { %v979_v49 = vadd.f32 %v978_v47, %v972_v44 }
 0x6d2   : > { %v980_v50 = vmul.f32 0.7978846, %v979_v49 }
 0x6d4   : > { %1262 = vtanh.f32 %v980_v50 }
 0x6da   : > { %v1263_v51 = vpop.eup %1262 }
 0x6db   : > { %v982_v53 = vadd.f32 1.0, %v1263_v51 }
 0x6dd   : > { %v983_v54 = vmul.f32 %v982_v53, %v975_v52 }
 0x6df   : > { %v984_v55 = vpack.c.bf16 %v983_v54, %v983_v54 }
 0x6e1   : > { %1194 = vmatmul.msk.bf16.vlgmr.msra.gmra.mxu3 %vm1021_vm12, %v984_v55 }
 0x764   : > { %v1034_v57 = vpop.f32.mrf.mxu3 }
 0x765   : > { %v1035_v58 = vadd.f32 %v1237_v56, %v1034_v57 }
 0x767   : > { %v1038_v59 = vadd.f32 %v1035_v58, %v937_v36 }
 0x769   : > { %v1041_v60 = vsel %vm536_vm0, %v1038_v59, 0.0 }
 0x76a   : > { %1042 = vadd.xlane.f32.xlu1 %v1041_v60 }
 0x76c   : > { %v1036_v61 = vpop.f32.mrf.mxu3 }
 0x7dd   : > { %v1043_v62 = vpop.xlane.xlu1 %1042 }
 0x7de   : > { %v1044_v63 = vmul.f32 %v1043_v62, %v1391_v9 }
 0x7e0   : > { %v1045_v0 = vsub.f32 %v1038_v59, %v1044_v63 }
 0x7e2   : > { %v1046_v1 = vmul.f32 %v1045_v0, %v1045_v0 }
 0x7e4   : > { %v1047_v2 = vsel %vm536_vm0, %v1046_v1, 0.0  ;;  %vm1072_vm0 = vcmask 257024  }
 0x7e5   : > { %1048 = vadd.xlane.f32.xlu2 %v1047_v2 }
 0x858   : > { %v1049_v3 = vpop.xlane.xlu2 %1048 }
 0x859   : > { %v1050_v4 = vmul.f32 %v1049_v3, %v1391_v9  ;;  %v1239_v9 = vld [vmem:[%s1538_s15] ss:$0 sm:$0xff] }
 0x85b   : > { %v1051_v5 = vadd.f32 1e-12, %v1050_v4 }
 0x85d   : > { %1264 = vrsqrt.f32 %v1051_v5  ;;  %vm1058_vm14 = vweird.f32 %v1051_v5 }
 0x863   : > { %v1265_v6 = vpop.eup %1264 }
 0x864   : > { %v1053_v7 = vmul.f32 %v1265_v6, %v1051_v5  ;;  %vm1059_vm13 = vweird.f32 %v1265_v6 }
 0x865   : > { %vm1060_vm15 = vmor %vm1058_vm14, %vm1059_vm13 }
 0x866   : > { %v1054_v8 = vmul.f32 %v1265_v6, %v1053_v7 }
 0x868   : > { %v1055_v10 = vmul.f32 0.5, %v1054_v8 }
 0x86a   : > { %v1056_v11 = vsub.f32 1.5, %v1055_v10 }
 0x86c   : > { %v1057_v12 = vmul.f32 %v1265_v6, %v1056_v11 }
 0x86e   : > { %v1061_v14 = vsel %vm1060_vm15, %v1265_v6, %v1057_v12 }
 0x86f   : > { %v1062_v15 = vmul.f32 %v1061_v14, %v1045_v0 }
 0x871   : > { %v1066_v16 = vmul.f32 %v1238_v13, %v1062_v15 }
 0x873   : > { %v1070_v17 = vadd.f32 %v1239_v9, %v1066_v16 }
 0x875   : > { %v1071_v18 = vpack.c.bf16 %v1070_v17, %v1070_v17 }
 0x877   : > { %1073 = vst.msk [vmem:[%s530_s27] sm:$0xf] %vm1072_vm0, %v1071_v18 }
 0x878 PF: > { %s26_s21 = sadd.s32 1, %s1272_s21  }
 0x879   : > { %p23_p4 = scmp.ge.s32.totalorder %s26_s21, 4  }
 0x87b   :  { %25 = sbr.rel (!%p23_p4) target bundleno = 2 (0x2), region = 117 }

// kernel: news_classifier_forward.3
= control target key start
LH: loop header
LB: loop body
LE: loop exit
PB: predicated region body
PF: predicated region fallthrough
CT: control target
= control target key end

     0   :  { %s1845_s0 = inlined_call_operand.vmem [shape: bf16[2,8,32], index: 0, kind: input, shape index: {}]   ;;  %s1846_s1 = inlined_call_operand.vmem [shape: f32[2,1,8], index: 1, kind: input, shape index: {}]   ;;  %s1847_s2 = inlined_call_operand.vmem [shape: bf16[32,96], index: 2, kind: input, shape index: {}]   ;;  %s1848_s3 = inlined_call_operand.vmem [shape: f32[1,96], index: 3, kind: input, shape index: {}]   ;;  %s1849_s4 = inlined_call_operand.vmem [shape: bf16[32,32], index: 4, kind: input, shape index: {}]   ;;  %s1850_s5 = inlined_call_operand.vmem [shape: f32[1,32], index: 5, kind: input, shape index: {}]   ;;  %s1851_s6 = inlined_call_operand.vmem [shape: f32[1,32], index: 6, kind: input, shape index: {}]   ;;  %s1852_s7 = inlined_call_operand.vmem [shape: f32[1,32], index: 7, kind: input, shape index: {}]   ;;  %s1853_s8 = inlined_call_operand.vmem [shape: bf16[32,64], index: 8, kind: input, shape index: {}]   ;;  %s1854_s9 = inlined_call_operand.vmem [shape: f32[1,64], index: 9, kind: input, shape index: {}]   ;;  %s1855_s10 = inlined_call_operand.vmem [shape: bf16[64,32], index: 10, kind: input, shape index: {}]   ;;  %s1856_s11 = inlined_call_operand.vmem [shape: f32[1,32], index: 11, kind: input, shape index: {}]   ;;  %s1857_s12 = inlined_call_operand.vmem [shape: f32[1,32], index: 12, kind: input, shape index: {}]   ;;  %s1858_s13 = inlined_call_operand.vmem [shape: f32[1,32], index: 13, kind: input, shape index: {}]   ;;  %s1859_s14 = inlined_call_operand.vmem [shape: bf16[32,32], index: 14, kind: input, shape index: {}]   ;;  %s1860_s15 = inlined_call_operand.vmem [shape: f32[1,32], index: 15, kind: input, shape index: {}]   ;;  %s1861_s16 = inlined_call_operand.vmem [shape: bf16[32,4], index: 16, kind: input, shape index: {}]   ;;  %s1862_s17 = inlined_call_operand.vmem [shape: f32[1,4], index: 17, kind: input, shape index: {}]   ;;  %s1863_s18 = inlined_call_operand.hbm [shape: f32[2,1,4], index: 18, kind: output, shape index: {}]  }
   0x1   :  { %1870 = sst [smem:[#allocation10_spill]] %s1845_s0 }
   0x2   :  { %1871 = sst [smem:[#allocation11_spill]] %s1846_s1 }
   0x3   :  { %1872 = sst [smem:[#allocation12_spill]] %s1847_s2 }
   0x4   :  { %1873 = sst [smem:[#allocation13_spill]] %s1848_s3 }
   0x5   :  { %1874 = sst [smem:[#allocation14_spill]] %s1849_s4 }
   0x6   :  { %23 = vsyncpa [#allocation3], 0 }
   0x7   :  { %25 = vsyncpa [#allocation3 + $0x1], 0  ;;  %s1620_s27 = smov 0   ;;  %s1622_s28 = smov 0  }
   0x8   :  { %s1624_s29 = smov 0   ;;  %s1626_s30 = smov 0  }
   0x9 LB: > { %1875 = sst [smem:[#allocation5_spill]] %s1496_s27  ;;  %s1641_s0 = sadd.s32 4294967295, %s1508_s30   ;;  %s1508_s30 = sphi %s1626_s30, %s1889_s30   ;;  %s1504_s29 = sphi %s1624_s29, %s1891_s29   ;;  %s1500_s28 = sphi %s1622_s28, %s1893_s28   ;;  %s1496_s27 = sphi %s1620_s27, %s1892_s27  }
   0xa   : > { %1876 = sst [smem:[#allocation6_spill]] %s1504_s29  ;;  %s1263_s19 = sadd.s32 4294967294, %s1508_s30  }
   0xb   : > { %s1645_s1 = sadd.s32 1, %s1508_s30   ;;  %s426_s20 = sadd.s32 1, %s1504_s29 }
   0xc   : > { %1877 = sst [smem:[#allocation7_spill]] %s1645_s1  ;;  %s423_s21 = ssub.s32 %s1508_s30, %s1645_s1 }
   0xd   : > { %p436_p0 = scmp.ne.s32.totalorder %s1504_s29, %s1500_s28  ;;  %p424_p1 = scmp.eq.s32.totalorder %s423_s21, 0 }
   0xe   : > { %p437_p2 = scmp.eq.s32.totalorder %s1641_s0, 1  ;;  %p442_p3 = scmp.ne.s32.totalorder %s1500_s28, %s1496_s27 }
   0xf   : > { %p443_p4 = scmp.eq.s32.totalorder %s1263_s19, 1  ;;  %p1266_p7 = scmp.ge.s32.totalorder %s1508_s30, 1 }
  0x10   : > { %s1656_s22 = scalar_select %p424_p1, %s1504_s29, %s426_s20  }
  0x11   : > { %p1658_p5 = por %p437_p2, %p436_p0  ;;  %p1662_p6 = por %p443_p4, %p442_p3 }
  0x12   : > { %1878 = sst [smem:[#allocation8_spill]] %s1656_s22  ;;  %p522_p8 = scmp.lt.s32.totalorder %s1508_s30, 3 }
  0x13   : > { %s1880_s23 = scalar_select %p1662_p6, 1, 0 }
  0x14   : > { %p523_p9 = pnand %p1266_p7, %p522_p8 }
  0x15   : > { %1881 = sst [smem:[#allocation9_spill]] %s1880_s23  ;;  %p577_p10 = scmp.lt.s32.totalorder (!%p523_p9), %s1641_s0, 1 }
  0x16   : > { %526 = sbr.rel (%p523_p9) target bundleno = 2467 (0x9a3), region = 92  ;;  %s1882_s26 = sld [smem:[#allocation12_spill]] (!%p523_p9) }
  0x17   : > { %s1883_s23 = sld [smem:[#allocation10_spill]] (!%p523_p9)  ;;  %s1510_s19 = smov (!%p523_p9), 104  }
  0x18   : > { %s1884_s3 = sld [smem:[#allocation13_spill]] (!%p523_p9)  ;;  %s1511_s29 = smov (!%p523_p9), 120  }
  0x19   : > { %s1513_s1 = smov (!%p523_p9), 80   ;;  %s1516_s20 = smov (!%p523_p9), 112  }
  0x1a   : > { %s1523_s24 = smov (!%p523_p9), 24   ;;  %s1886_s4 = sld [smem:[#allocation14_spill]] (!%p523_p9) }
  0x1b   : > { %s1676_s21 = scalar_select %p577_p10, %s1641_s0, 1  ;;  %vm607_vm0 = vcmask 261120   ;;  %vm631_vm1 = vcmask 64512   ;;  %vm673_vm2 = vcmask 1043456   ;;  %vm877_vm3 = vcmask 130048  }
  0x1c   : > { %v1341_v0 = vld [vmem:[%s1882_s26 + $0x8] sm:$0xff]  ;;  %v1340_v1 = vld [vmem:[%s1882_s26] sm:$0xff]  ;;  %vm879_vm4 = vcmask 195584   ;;  %vm1041_vm9 = vcmask 523264   ;;  %vm1160_vm13 = vcmask 24576  }
  0x1d   : > { %617 = vmatpush.bf16.msra.mxu0 %v1341_v0  ;;  %s1267_s22 = sshll.u32 %s1676_s21, 2 }
  0x1e   : > { %s580_s27 = scalar_lea.vmem %s1883_s23, %s1267_s22  ;;  %v1408_v3 = vld [vmem:[%s1884_s3] ss:$0 sm:$0xff]  ;;  %s1514_s22 = smov 72  }
  0x1f   : > { %v1682_v2 = vld [vmem:[%s580_s27] sm:$0xf]  ;;  %s1512_s27 = smov 96   ;;  %s1515_s23 = smov 88  }
  0x21   : > { %618 = vmatpush.bf16.msra.mxu0 %v1340_v1 }
  0x24   : > { %1276 = vmatmul.msk.bf16.vlgmr.msra.gmra.mxu0 %vm607_vm0, %v1682_v2 }
  0xa1   : > { %v620_v4 = vpop.f32.mrf.mxu0 }
  0xa2   : > { %v621_v5 = vadd.f32 %v1408_v3, %v620_v4 }
  0xa4   : > { %v1689_v6 = vpack.c.bf16 %v621_v5, %v621_v5 }
  0xa6   : > { %806 = vrot.lane.b32.xlu2 %v1689_v6, %s1510_s19  ;;  %690 = vrot.lane.b32.xlu1 %v1689_v6, %s1511_s29  ;;  %s1885_s19 = sld [smem:[#allocation11_spill]] }
  0xa7   : > { %629 = vrot.lane.b32.xlu0 %v1689_v6, %s1512_s27  ;;  %s1518_s27 = smov 40  }
  0xa9   : > { %v622_v7 = vpop.f32.mrf.mxu0 }
  0xac   : > { %s583_s29 = scalar_lea.vmem %s1885_s19, %s1676_s21  ;;  %s1517_s21 = smov 64  }
  0xad   : > { %v624_v19 = vld [vmem:[%s583_s29] sm:$0x1]  ;;  %s575_s29 = sand.u32 1, %s1500_s28  }
  0xae   : > { %750 = vrot.lane.b32.xlu2 %v1689_v6, %s1513_s1  ;;  %808 = vrot.lane.b32.xlu1 %v1689_v6, %s1514_s22  ;;  %v625_v20 = vsub.f32 1.0, %v624_v19  ;;  %s1519_s1 = smov 56   ;;  %s1520_s22 = smov 48  }
  0xaf   : > { %692 = vrot.lane.b32.xlu0 %v1689_v6, %s1515_s23  ;;  %s1521_s23 = smov 8  }
  0xb0   : > { %v626_v21 = vmul.f32 -10000.0, %v625_v20 }
  0xb2   : > { %v653_v22 = vperm.slane %v626_v21, 0 }
  0xb7   : > { %748 = vrot.lane.b32.xlu0 %v1689_v6, %s1516_s20  ;;  %s1522_s20 = smov 16  }
 0x100   : > { %v807_v8 = vpop.permute.xlu2 %806 }
 0x108   : > { %v751_v9 = vpop.permute.xlu2 %750 }
 0x109   : > { %v756_v10 = vsel %vm631_vm1, %v751_v9, 0 }
 0x10a   : > { %765 = vmatpush.bf16.xpose.msrb.mxu0 %v756_v10 }
 0x118   : > { %v691_v11 = vpop.permute.xlu1 %690 }
 0x119   : > { %v630_v12 = vpop.permute.xlu0 %629 }
 0x11a   : > { %v636_v13 = vsel %vm631_vm1, %v630_v12, 0 }
 0x11b   : > { %645 = vmatpush.bf16.xpose.msra.mxu1 %v636_v13 }
 0x120   : > { %v809_v14 = vpop.permute.xlu1 %808 }
 0x121   : > { %v693_v15 = vpop.permute.xlu0 %692  ;;  %v814_v16 = vsel %vm631_vm1, %v809_v14, 0 }
 0x122   : > { %1277 = vmatmul.msk.bf16.vlgmr.msra.gmra.mxu1 %vm631_vm1, %v1689_v6  ;;  %v698_v17 = vsel %vm631_vm1, %v693_v15, 0 }
 0x123   : > { %707 = vmatpush.bf16.xpose.msra.mxu3 %v698_v17 }
 0x129   : > { %v749_v18 = vpop.permute.xlu0 %748 }
 0x12a   : > { %1279 = vmatmul.msk.bf16.vlgmr.msra.gmra.mxu3 %vm631_vm1, %v691_v11  ;;  %1281 = vmatmul.msk.bf16.vlgmr.msrb.gmra.mxu0 %vm631_vm1, %v749_v18 }
 0x12b   : > { %823 = vmatpush.bf16.xpose.msrb.mxu3 %v814_v16 }
 0x13a   : > { %1283 = vmatmul.msk.bf16.vlgmr.msrb.gmra.mxu3 %vm631_vm1, %v807_v8 }
 0x19f   : > { %v647_v23 = vpop.f32.mrf.mxu1 }
 0x1a0   : > { %v651_v24 = vmul.f32 0.35355338, %v647_v23 }
 0x1a2   : > { %v655_v25 = vadd.f32 %v653_v22, %v651_v24 }
 0x1a4   : > { %v656_v26 = vsel %vm631_vm1, %v655_v25, -inf }
 0x1a5   : > { %657 = vmax.xlane.f32.xlu1 %v656_v26 }
 0x1a7   : > { %v649_v27 = vpop.f32.mrf.mxu1  ;;  %v767_v28 = vpop.f32.mrf.mxu0 }
 0x1a8   : > { %v771_v33 = vmul.f32 0.35355338, %v767_v28 }
 0x1aa   : > { %v772_v36 = vadd.f32 %v771_v33, %v653_v22  ;;  %v1342_v33 = vld [vmem:[%s1886_s4] sm:$0xff] }
 0x1ac   : > { %v773_v37 = vsel %vm631_vm1, %v772_v36, -inf }
 0x1ad   : > { %v709_v29 = vpop.f32.mrf.mxu3 }
 0x1ae   : > { %v713_v30 = vmul.f32 0.35355338, %v709_v29 }
 0x1af   : > { %v769_v31 = vpop.f32.mrf.mxu0 }
 0x1b0   : > { %v714_v32 = vadd.f32 %v713_v30, %v653_v22 }
 0x1b2   : > { %v715_v34 = vsel %vm631_vm1, %v714_v32, -inf }
 0x1b3   : > { %716 = vmax.xlane.f32.xlu2 %v715_v34 }
 0x1b5   : > { %v711_v35 = vpop.f32.mrf.mxu3 }
 0x1bb   : > { %774 = vmax.xlane.f32.xlu2 %v773_v37 }
 0x1bd   : > { %v825_v38 = vpop.f32.mrf.mxu3 }
 0x1be   : > { %v829_v39 = vmul.f32 0.35355338, %v825_v38 }
 0x1c0   : > { %v830_v40 = vadd.f32 %v829_v39, %v653_v22 }
 0x1c2   : > { %v831_v41 = vsel %vm631_vm1, %v830_v40, -inf }
 0x1c3   : > { %832 = vmax.xlane.f32.xlu0 %v831_v41  ;;  %v1409_v41 = vld [vmem:[%s1850_s5] ss:$0 sm:$0xff] }
 0x1c5   : > { %v827_v42 = vpop.f32.mrf.mxu3 }
 0x1c6   : > { %v586_v42 = vunpack.c.l.bf16 %v1682_v2 }
 0x1d3   : > { %668 = vrot.lane.b32.xlu2 %v1689_v6, %s1517_s21 }
 0x1db   : > { %843 = vrot.lane.b32.xlu2 %v1689_v6, %s1518_s27  ;;  %s1466_s27 = scalar_lea.hbm %s1863_s18, 2 }
 0x218   : > { %v658_v43 = vpop.xlane.xlu1 %657 }
 0x219   : > { %v659_v44 = vsub.f32 %v655_v25, %v658_v43 }
 0x21b   : > { %v660_v45 = vmul.f32 1.442695, %v659_v44 }
 0x21d   : > { %1416 = vpow2.f32 %v660_v45 }
 0x223   : > { %v1417_v46 = vpop.eup %1416 }
 0x224   : > { %v662_v47 = vsel %vm631_vm1, %v1417_v46, 0.0 }
 0x225   : > { %663 = vadd.xlane.f32.xlu1 %v662_v47 }
 0x226   : > { %v717_v48 = vpop.xlane.xlu2 %716 }
 0x227   : > { %v718_v51 = vsub.f32 %v714_v32, %v717_v48  ;;  %v1343_v32 = vld [vmem:[%s1886_s4 + $0x8] sm:$0xff]  ;;  %v1524_v48 = vmov 32.0  }
 0x228   : > { %911 = vmatpush.bf16.msra.mxu0 %v1343_v32  ;;  %v1413_v32 = vld [vmem:[%s1856_s11] ss:$0 sm:$0xff] }
 0x229   : > { %v719_v53 = vmul.f32 1.442695, %v718_v51 }
 0x22c   : > { %912 = vmatpush.bf16.msra.mxu0 %v1342_v33 }
 0x22e   : > { %v775_v49 = vpop.xlane.xlu2 %774 }
 0x22f   : > { %v776_v50 = vsub.f32 %v772_v36, %v775_v49 }
 0x231   : > { %v777_v52 = vmul.f32 1.442695, %v776_v50 }
 0x233   : > { %1418 = vpow2.f32 %v777_v52 }
 0x234   : > { %1420 = vpow2.f32 %v719_v53 }
 0x236   : > { %v669_v54 = vpop.permute.xlu2 %668  ;;  %v833_v55 = vpop.xlane.xlu0 %832 }
 0x237   : > { %v675_v56 = vsel %vm673_vm2, %v669_v54, 0  ;;  %v834_v58 = vsub.f32 %v830_v40, %v833_v55 }
 0x238   : > { %684 = vmatpush.bf16.msra.mxu2 %v675_v56 }
 0x239   : > { %v1419_v57 = vpop.eup %1418  ;;  %v835_v60 = vmul.f32 1.442695, %v834_v58 }
 0x23a   : > { %v779_v59 = vsel %vm631_vm1, %v1419_v57, 0.0  ;;  %v1421_v61 = vpop.eup %1420 }
 0x23b   : > { %780 = vadd.xlane.f32.xlu0 %v779_v59  ;;  %1422 = vpow2.f32 %v835_v60  ;;  %v721_v62 = vsel %vm631_vm1, %v1421_v61, 0.0  ;;  %v1345_v59 = vld [vmem:[%s1853_s8 + $0x8] sm:$0xff]  ;;  %v1344_v60 = vld [vmem:[%s1853_s8] sm:$0xff] }
 0x23e   : > { %727 = vrot.lane.b32.xlu1 %v1689_v6, %s1519_s1  ;;  %v844_v8 = vpop.permute.xlu2 %843  ;;  %s1195_s1 = scalar_lea.hbm %s1863_s18, %s1641_s0 }
 0x23f   : > { %v849_v11 = vsel %vm673_vm2, %v844_v8, 0  ;;  %v1410_v8 = vld [vmem:[%s1851_s6] ss:$0 sm:$0xff] }
 0x241   : > { %v1423_v63 = vpop.eup %1422 }
 0x242   : > { %v837_v0 = vsel %vm631_vm1, %v1423_v63, 0.0 }
 0x243   : > { %722 = vadd.xlane.f32.xlu0 %v721_v62 }
 0x24b   : > { %838 = vadd.xlane.f32.xlu0 %v837_v0 }
 0x25f   : > { %785 = vrot.lane.b32.xlu0 %v1689_v6, %s1520_s22  ;;  %s576_s22 = scalar_lea.vmem [#allocation2], %s575_s29 }
 0x298   : > { %v664_v1 = vpop.xlane.xlu1 %663 }
 0x299   : > { %1424 = vrcp.f32 %v664_v1 }
 0x29f   : > { %v1425_v3 = vpop.eup %1424 }
 0x2a0   : > { %v666_v4 = vmul.f32 %v1425_v3, %v1417_v46 }
 0x2a2   : > { %v667_v5 = vpack.c.bf16 %v666_v4, %v666_v4 }
 0x2a4   : > { %1278 = vmatmul.msk.bf16.vlgmr.msra.gmra.mxu2 %vm631_vm1, %v667_v5 }
 0x2ae   : > { %v781_v7 = vpop.xlane.xlu0 %780 }
 0x2b0   : > { %v728_v9 = vpop.permute.xlu1 %727 }
 0x2b1   : > { %v733_v10 = vsel %vm673_vm2, %v728_v9, 0 }
 0x2b2   : > { %742 = vmatpush.bf16.msrb.mxu2 %v733_v10  ;;  %v1411_v10 = vld [vmem:[%s1852_s7] ss:$0 sm:$0xff] }
 0x2b6   : > { %858 = vmatpush.bf16.msra.mxu2 %v849_v11  ;;  %v723_v12 = vpop.xlane.xlu0 %722 }
 0x2b7   : > { %1426 = vrcp.f32 %v723_v12 }
 0x2bd   : > { %v1427_v13 = vpop.eup %1426 }
 0x2be   : > { %v725_v6 = vmul.f32 %v1427_v13, %v1421_v61  ;;  %v839_v14 = vpop.xlane.xlu0 %838 }
 0x2bf   : > { %1428 = vrcp.f32 %v839_v14  ;;  %v1349_v14 = vld [vmem:[%s1855_s10 + $0x18] sm:$0xff] }
 0x2c0   : > { %v726_v15 = vpack.c.bf16 %v725_v6, %v725_v6  ;;  %1430 = vrcp.f32 %v781_v7  ;;  %1049 = vmatpush.bf16.msra.mxu3 %v1349_v14 }
 0x2c1   : > { %1432 = vrcp.f32 %v1524_v48 }
 0x2c2   : > { %1280 = vmatmul.msk.bf16.vlgmr.msrb.gmra.mxu2 %vm631_vm1, %v726_v15  ;;  %v1348_v15 = vld [vmem:[%s1855_s10 + $0x10] sm:$0xff] }
 0x2c4   : > { %1050 = vmatpush.bf16.msra.mxu3 %v1348_v15 }
 0x2c5   : > { %v1429_v16 = vpop.eup %1428 }
 0x2c6   : > { %v841_v17 = vmul.f32 %v1429_v16, %v1423_v63  ;;  %v1431_v18 = vpop.eup %1430  ;;  %v1347_v16 = vld [vmem:[%s1855_s10 + $0x8] sm:$0xff] }
 0x2c7   : > { %v783_v19 = vmul.f32 %v1431_v18, %v1419_v57  ;;  %v1433_v49 = vpop.eup %1432  ;;  %v1412_v18 = vld [vmem:[%s1854_s9] ss:$0 sm:$0xff] }
 0x2c8   : > { %v842_v20 = vpack.c.bf16 %v841_v17, %v841_v17  ;;  %v925_v50 = vmul.f32 32.0, %v1433_v49  ;;  %vm929_vm5 = vweird.f32 %v1433_v49  ;;  %1051 = vmatpush.bf16.msra.mxu3 %v1347_v16  ;;  %v1346_v17 = vld [vmem:[%s1855_s10] sm:$0xff] }
 0x2c9   : > { %v784_v23 = vpack.c.bf16 %v783_v19, %v783_v19 }
 0x2ca   : > { %v926_v51 = vsub.f32 1.0, %v925_v50 }
 0x2cc   : > { %v927_v52 = vmul.f32 %v1433_v49, %v926_v51  ;;  %1052 = vmatpush.bf16.msra.mxu3 %v1346_v17 }
 0x2ce   : > { %v928_v53 = vadd.f32 %v1433_v49, %v927_v52 }
 0x2d0   : > { %v1744_v54 = vsel %vm929_vm5, %v1433_v49, %v928_v53 }
 0x2d1   : > { %v786_v21 = vpop.permute.xlu0 %785 }
 0x2d2   : > { %1284 = vmatmul.msk.bf16.vlgmr.msra.gmra.mxu2 %vm631_vm1, %v842_v20  ;;  %v791_v22 = vsel %vm673_vm2, %v786_v21, 0 }
 0x2d3   : > { %800 = vmatpush.bf16.msrb.mxu1 %v791_v22 }
 0x2d6   : > { %1282 = vmatmul.msk.bf16.vlgmr.msrb.gmra.mxu1 %vm631_vm1, %v784_v23 }
 0x2d7   : > { %988 = vmatpush.bf16.msra.mxu1 %v1345_v59 }
 0x2db   : > { %989 = vmatpush.bf16.msra.mxu1 %v1344_v60 }
 0x327   : > { %v686_v24 = vpop.f32.mrf.mxu2 }
 0x32f   : > { %v688_v25 = vpop.f32.mrf.mxu2 }
 0x345   : > { %v744_v26 = vpop.f32.mrf.mxu2 }
 0x346   : > { %865 = vrot.lane.b32.xlu1 %v744_v26, %s1521_s23  ;;  %s1197_s23 = sshll.u32 %s576_s22, 4  ;;  %s1198_s23 = int_to_ptr.vmem [resolvable:$true] %s1197_s23 }
 0x34d   : > { %v746_v27 = vpop.f32.mrf.mxu2 }
 0x353   : > { %v802_v28 = vpop.f32.mrf.mxu1 }
 0x354   : > { %869 = vrot.lane.b32.xlu2 %v802_v28, %s1522_s20  ;;  %s1199_s20 = sshll.u32 %s1195_s1, 4  ;;  %s1200_s20 = int_to_ptr.hbm [resolvable:$true] %s1199_s20 }
 0x355   : > { %v860_v29 = vpop.f32.mrf.mxu2  ;;  %s1460_s25 = sshra.s32 %s1200_s20, 4  ;;  %s1461_s25 = int_to_ptr.hbm [resolvable:$true] %s1460_s25 }
 0x356   : > { %873 = vrot.lane.b32.xlu1 %v860_v29, %s1523_s24  ;;  %s1187_s24 = scalar_lea.sflag [#allocation3], %s575_s29  ;;  %s1462_s0 = scalar_lea.hbm %s1461_s25, 1 }
 0x357   : > { %p1463_p11 = scmp.ne.s32.totalorder %s1461_s25, %s1462_s0  ;;  %p1467_p0 = scmp.lt.s32.totalorder %s1461_s25, %s1863_s18 }
 0x358   : > { %p1468_p1 = scmp.lt.s32.totalorder %s1466_s27, %s1462_s0 }
 0x359   : > { %p1464_p12 = pnand %p1463_p11, %p1658_p5 }
 0x35a   : > { %p1469_p2 = por %p1468_p1, %p1467_p0 }
 0x35b   : > { %v804_v30 = vpop.f32.mrf.mxu1  ;;  %p1465_p13 = pneg %p1464_p12 }
 0x35d   : > { %v862_v31 = vpop.f32.mrf.mxu2  ;;  %p1470_p3 = pnand %p1469_p2, %p1465_p13 }
 0x3ae   : > { %v870_v36 = vpop.permute.xlu2 %869 }
 0x3b8   : > { %v866_v34 = vpop.permute.xlu1 %865 }
 0x3b9   : > { %v876_v35 = vsel %vm631_vm1, %v686_v24, %v866_v34 }
 0x3ba   : > { %v878_v38 = vsel %vm877_vm3, %v876_v35, %v870_v36 }
 0x3c8   : > { %v874_v37 = vpop.permute.xlu1 %873 }
 0x3c9   : > { %v880_v39 = vsel %vm879_vm4, %v878_v38, %v874_v37 }
 0x3ca   : > { %v881_v40 = vpack.c.bf16 %v880_v39, %v880_v39 }
 0x3cc   : > { %1293 = vmatmul.msk.bf16.vlgmr.msra.gmra.mxu0 %vm607_vm0, %v881_v40 }
 0x449   : > { %v914_v43 = vpop.f32.mrf.mxu0 }
 0x44a   : > { %v915_v44 = vadd.f32 %v1409_v41, %v914_v43  ;;  %v1351_v43 = vld [vmem:[%s1859_s14 + $0x8] sm:$0xff] }
 0x44b   : > { %1118 = vmatpush.bf16.msrb.mxu2 %v1351_v43 }
 0x44c   : > { %v918_v45 = vadd.f32 %v915_v44, %v586_v42  ;;  %v1350_v44 = vld [vmem:[%s1859_s14] sm:$0xff] }
 0x44e   : > { %v921_v46 = vsel %vm607_vm0, %v918_v45, 0.0 }
 0x44f   : > { %922 = vadd.xlane.f32.xlu2 %v921_v46  ;;  %1119 = vmatpush.bf16.msrb.mxu2 %v1350_v44 }
 0x451   : > { %v916_v47 = vpop.f32.mrf.mxu0 }
 0x4c2   : > { %v923_v55 = vpop.xlane.xlu2 %922 }
 0x4c3   : > { %v931_v2 = vmul.f32 %v1744_v54, %v923_v55 }
 0x4c5   : > { %v932_v56 = vsub.f32 %v918_v45, %v931_v2  ;;  %v1353_v45 = vld [vmem:[%s1861_s16 + $0x8] sm:$0xff]  ;;  %v1414_v2 = vld [vmem:[%s1857_s12] ss:$0 sm:$0xff] }
 0x4c6   : > { %1153 = vmatpush.bf16.msrb.mxu0 %v1353_v45 }
 0x4c7   : > { %v933_v57 = vmul.f32 %v932_v56, %v932_v56 }
 0x4c9   : > { %v934_v58 = vsel %vm607_vm0, %v933_v57, 0.0 }
 0x4ca   : > { %935 = vadd.xlane.f32.xlu1 %v934_v58 }
 0x53d   : > { %v936_v61 = vpop.xlane.xlu1 %935 }
 0x53e   : > { %v937_v62 = vmul.f32 %v936_v61, %v1744_v54  ;;  %v1352_v61 = vld [vmem:[%s1861_s16] sm:$0xff] }
 0x53f   : > { %1154 = vmatpush.bf16.msrb.mxu0 %v1352_v61 }
 0x540   : > { %v938_v63 = vadd.f32 1e-12, %v937_v62  ;;  %v1096_v62 = vld [vmem:[%s1860_s15] sm:$0x1] }
 0x542   : > { %1434 = vrsqrt.f32 %v938_v63  ;;  %vm945_vm7 = vweird.f32 %v938_v63 }
 0x548   : > { %v1435_v0 = vpop.eup %1434 }
 0x549   : > { %v940_v1 = vmul.f32 %v1435_v0, %v938_v63  ;;  %vm946_vm6 = vweird.f32 %v1435_v0 }
 0x54a   : > { %vm947_vm8 = vmor %vm945_vm7, %vm946_vm6 }
 0x54b   : > { %v941_v3 = vmul.f32 %v1435_v0, %v940_v1 }
 0x54d   : > { %v942_v4 = vmul.f32 0.5, %v941_v3 }
 0x54f   : > { %v943_v5 = vsub.f32 1.5, %v942_v4 }
 0x551   : > { %v944_v7 = vmul.f32 %v1435_v0, %v943_v5  ;;  %v1131_v5 = vld [vmem:[%s1862_s17] sm:$0x1] }
 0x553   : > { %v948_v9 = vsel %vm947_vm8, %v1435_v0, %v944_v7 }
 0x554   : > { %v949_v11 = vmul.f32 %v948_v9, %v932_v56 }
 0x556   : > { %v953_v12 = vmul.f32 %v1410_v8, %v949_v11 }
 0x558   : > { %v957_v13 = vadd.f32 %v1411_v10, %v953_v12 }
 0x55a   : > { %v958_v6 = vpack.c.bf16 %v957_v13, %v957_v13 }
 0x55c   : > { %1302 = vmatmul.msk.bf16.vlgmr.msra.gmra.mxu1 %vm607_vm0, %v958_v6 }
 0x5d9   : > { %v991_v19 = vpop.f32.mrf.mxu1 }
 0x5da   : > { %v992_v20 = vadd.f32 %v1412_v18, %v991_v19 }
 0x5dc   : > { %v996_v21 = vmul.f32 0.044715, %v992_v20  ;;  %v995_v28 = vmul.f32 0.5, %v992_v20 }
 0x5de   : > { %v997_v22 = vmul.f32 %v996_v21, %v992_v20 }
 0x5e0   : > { %v998_v23 = vmul.f32 %v997_v22, %v992_v20 }
 0x5e1   : > { %v993_v24 = vpop.f32.mrf.mxu1 }
 0x5e2   : > { %v999_v25 = vadd.f32 %v998_v23, %v992_v20 }
 0x5e4   : > { %v1000_v26 = vmul.f32 0.7978846, %v999_v25 }
 0x5e6   : > { %1436 = vtanh.f32 %v1000_v26 }
 0x5ec   : > { %v1437_v27 = vpop.eup %1436 }
 0x5ed   : > { %v1002_v29 = vadd.f32 1.0, %v1437_v27 }
 0x5ef   : > { %v1003_v30 = vmul.f32 %v1002_v29, %v995_v28 }
 0x5f1   : > { %v1004_v31 = vpack.c.bf16 %v1003_v30, %v1003_v30 }
 0x5f3   : > { %1319 = vmatmul.msk.bf16.vlgmr.msra.gmra.mxu3 %vm1041_vm9, %v1004_v31 }
 0x676   : > { %v1054_v33 = vpop.f32.mrf.mxu3 }
 0x677   : > { %v1055_v34 = vadd.f32 %v1413_v32, %v1054_v33 }
 0x679   : > { %v1058_v35 = vadd.f32 %v1055_v34, %v957_v13 }
 0x67b   : > { %v1061_v36 = vsel %vm607_vm0, %v1058_v35, 0.0 }
 0x67c   : > { %1062 = vadd.xlane.f32.xlu0 %v1061_v36 }
 0x67e   : > { %v1056_v37 = vpop.f32.mrf.mxu3 }
 0x6ef   : > { %v1063_v38 = vpop.xlane.xlu0 %1062 }
 0x6f0   : > { %v1064_v39 = vmul.f32 %v1063_v38, %v1744_v54 }
 0x6f2   : > { %v1065_v40 = vsub.f32 %v1058_v35, %v1064_v39 }
 0x6f4   : > { %v1066_v41 = vmul.f32 %v1065_v40, %v1065_v40 }
 0x6f6   : > { %v1067_v42 = vsel %vm607_vm0, %v1066_v41, 0.0 }
 0x6f7   : > { %1068 = vadd.xlane.f32.xlu2 %v1067_v42 }
 0x76a   : > { %v1069_v46 = vpop.xlane.xlu2 %1068 }
 0x76b   : > { %v1070_v47 = vmul.f32 %v1069_v46, %v1744_v54  ;;  %v1415_v54 = vld [vmem:[%s1858_s13] ss:$0 sm:$0xff] }
 0x76d   : > { %v1071_v48 = vadd.f32 1e-12, %v1070_v47 }
 0x76f   : > { %1438 = vrsqrt.f32 %v1071_v48  ;;  %vm1078_vm11 = vweird.f32 %v1071_v48 }
 0x775   : > { %v1439_v49 = vpop.eup %1438 }
 0x776   : > { %v1073_v50 = vmul.f32 %v1439_v49, %v1071_v48  ;;  %vm1079_vm10 = vweird.f32 %v1439_v49 }
 0x777   : > { %vm1080_vm12 = vmor %vm1078_vm11, %vm1079_vm10 }
 0x778   : > { %v1074_v51 = vmul.f32 %v1439_v49, %v1073_v50 }
 0x77a   : > { %v1075_v52 = vmul.f32 0.5, %v1074_v51 }
 0x77c   : > { %v1076_v53 = vsub.f32 1.5, %v1075_v52 }
 0x77e   : > { %v1077_v55 = vmul.f32 %v1439_v49, %v1076_v53 }
 0x780   : > { %v1081_v56 = vsel %vm1080_vm12, %v1439_v49, %v1077_v55 }
 0x781   : > { %v1082_v57 = vmul.f32 %v1081_v56, %v1065_v40 }
 0x783   : > { %v1086_v58 = vmul.f32 %v1414_v2, %v1082_v57 }
 0x785   : > { %v1090_v59 = vadd.f32 %v1415_v54, %v1086_v58 }
 0x787   : > { %v1091_v60 = vpack.c.bf16 %v1090_v59, %v1090_v59 }
 0x789   : > { %1328 = vmatmul.msk.bf16.vlgmr.msrb.gmra.mxu2 %vm607_vm0, %v1091_v60 }
 0x80c   : > { %v1121_v63 = vpop.f32.mrf.mxu2 }
 0x80d   : > { %v1122_v0 = vadd.f32 %v1121_v63, %v1096_v62 }
 0x80f   : > { %1440 = vtanh.f32 %v1122_v0 }
 0x814   : > { %v1123_v1 = vpop.f32.mrf.mxu2 }
 0x815   : > { %v1441_v3 = vpop.eup %1440 }
 0x816   : > { %v1126_v4 = vpack.c.bf16 %v1441_v3, %v1441_v3 }
 0x818   : > { %1337 = vmatmul.msk.bf16.vlgmr.msrb.gmra.mxu0 %vm607_vm0, %v1126_v4 }
 0x895   : > { %v1156_v7 = vpop.f32.mrf.mxu0 }
 0x896   : > { %v1157_v8 = vadd.f32 %v1156_v7, %v1131_v5 }
 0x898   : > { %v1161_v9 = vsel %vm1160_vm13, %v1157_v8, -inf }
 0x899   : > { %1162 = vmax.xlane.f32.xlu1 %v1161_v9 }
 0x89d   : > { %v1158_v10 = vpop.f32.mrf.mxu0 }
 0x90c   : > { %v1163_v11 = vpop.xlane.xlu1 %1162 }
 0x90d   : > { %v1164_v12 = vsub.f32 %v1157_v8, %v1163_v11 }
 0x90f   : > { %v1165_v13 = vmul.f32 1.442695, %v1164_v12 }
 0x911   : > { %1442 = vpow2.f32 %v1165_v13 }
 0x917   : > { %v1443_v6 = vpop.eup %1442 }
 0x918   : > { %v1167_v14 = vsel %vm1160_vm13, %v1443_v6, 0.0 }
 0x919   : > { %1168 = vadd.xlane.f32.xlu0 %v1167_v14 }
 0x98c   : > { %v1169_v15 = vpop.xlane.xlu0 %1168 }
 0x98d   : > { %1444 = vrcp.f32 %v1169_v15  ;;  %v1181_v19 = vand.u32 2147483648, %v1169_v15  ;;  %v1179_v21 = vand.u32 2147483647, %v1169_v15  ;;  %vm1175_vm15 = vweird.f32 %v1169_v15 }
 0x98f   : > { %v1182_v23 = vor.u32 1.1754944e-38, %v1181_v19  ;;  %vm1180_vm1 = vcmp.eq.f32.partialorder %v1179_v21, 8.507059e+37 }
 0x993   : > { %v1445_v16 = vpop.eup %1444 }
 0x994   : > { %v1171_v17 = vmul.f32 %v1445_v16, %v1169_v15  ;;  %vm1176_vm14 = vweird.f32 %v1445_v16 }
 0x995   : > { %vm1177_vm0 = vmor %vm1175_vm15, %vm1176_vm14 }
 0x996   : > { %v1172_v18 = vsub.f32 1.0, %v1171_v17 }
 0x998   : > { %v1173_v20 = vmul.f32 %v1445_v16, %v1172_v18 }
 0x99a   : > { %v1174_v22 = vadd.f32 %v1445_v16, %v1173_v20 }
 0x99c   : > { %v1178_v24 = vsel %vm1177_vm0, %v1445_v16, %v1174_v22 }
 0x99d   : > { %v1183_v25 = vsel %vm1180_vm1, %v1182_v23, %v1178_v24 }
 0x99e   : > { %v1184_v26 = vmul.f32 %v1443_v6, %v1183_v25 }
 0x9a0   : > { %1185 = vst.msk [vmem:[%s576_s22] sm:$0x1] %vm1160_vm13, %v1184_v26 }
 0x9a1   : > { %1473 = shalt.err (!%p1470_p3)
}
 0x9a2   : > { %1354 = dma.vmem_to_hbm [thread:$0]  (%p1658_p5), %s1198_s23, 16, %s1200_s20, %s1187_s24  }
 0x9a3 PF: > { %s1887_s29 = sld [smem:[#allocation5_spill]]  ;;  %p1360_p4 = scmp.ge.s32.totalorder %s1508_s30, 2 }
 0x9a5   : > { %p1357_p7 = pnand %p1360_p4, %p1662_p6 }
 0x9a7   : > { %p1358_p8 = pneg %p1357_p7 }
 0x9a9   : > { %s1211_s4 = sand.u32 1, %s1887_s29  }
 0x9aa   : > { %s1212_s19 = scalar_lea.sflag [#allocation3], %s1211_s4 }
 0x9ab   : > { %1491 = dma.done.wait (%p1358_p8), %s1212_s19, 16  }
 0x9ac   : > { %1493 = vsyncadd (%p1358_p8), %s1212_s19, 4294967280  ;;  %s1889_s30 = sld [smem:[#allocation7_spill]]  ;;  %s1892_s27 = smov %s1500_s28 }
 0x9ad   : > { %s1890_s3 = sld [smem:[#allocation6_spill]] }
 0x9ae   : > { %s1891_s29 = sld [smem:[#allocation8_spill]] }
 0x9b2   : > { %p28_p9 = scmp.ge.s32.totalorder %s1889_s30, 4  }
 0x9b3   : > { %s1893_s28 = smov %s1890_s3 }
 0x9b4   :  { %30 = sbr.rel (!%p28_p9) target bundleno = 9 (0x9), region = 130 }
 0x9b9   :  { %1217 = vsyncpa [#allocation3], 1 }
 0x9ba   :  { %1219 = vsyncpa [#allocation3 + $0x1], 1 }

</bundles_post_ra>
